<compile_context>
chip_gen: v6e
topology: v6e:2x2x1
jax: 0.10.0
libtpu: 0.0.40
codegen_flags: <defaults>
</compile_context>

<pallas_src>
import jax
import jax.numpy as jnp
from jax import lax
from jax.experimental import pallas as pl
from jax.experimental.pallas import tpu as pltpu


def _fuse_dx(h):
    """h: (rows, W, Cb) f32 -> (rows, W, 3*Cb) bf16 with dx = -1 / 0 / +1 taps
    packed along lanes (matching w2 reshaped to (3, 3*Cb, Cb), dx-major)."""
    rows, W, Cb = h.shape
    z = jnp.zeros((rows, 1, Cb), h.dtype)
    left = jnp.concatenate([z, h[:, :W - 1, :]], axis=1)     # holds h1[x-1] (dx=0 tap)
    right = jnp.concatenate([h[:, 1:, :], z], axis=1)        # holds h1[x+1] (dx=2 tap)
    fused = jnp.concatenate([left, h, right], axis=-1)       # (rows, W, 3*Cb) f32
    return fused.astype(jnp.bfloat16)


def bottleneck_kernel(xt_ref, xm_ref, xb_ref,
                      w1_ref, s1_ref, b1_ref,
                      w2f_ref, s2_ref, b2_ref,
                      w3_ref, s3_ref, b3_ref,
                      out_ref, h1p_ref):
    TH, W, Cin = xm_ref.shape[1], xm_ref.shape[2], xm_ref.shape[3]
    Cb = w1_ref.shape[1]
    Cout = w3_ref.shape[1]
    R = TH + 2                       # tile rows + one halo row above / below

    j = pl.program_id(1)
    nj = pl.num_programs(1)

    def conv1(x2d):                  # (M, Cin) f32 -> (M, Cb) f32, bn1+relu fused
        h = jnp.dot(x2d.astype(jnp.bfloat16), w1_ref[...],
                    preferred_element_type=jnp.float32)
        return jnp.maximum(h * s1_ref[...] + b1_ref[...], 0.0)

    # ---- conv1 (1x1) + bn1 + relu, written straight into the fused scratch --
    x_main = xm_ref[0]                                        # (TH, W, Cin) f32
    h1 = conv1(x_main.reshape(TH * W, Cin)).reshape(TH, W, Cb)
    h1p_ref[1:TH + 1] = _fuse_dx(h1)

    # Halo rows: tiny 1-row conv1 matmuls (computed unconditionally — at image
    # edges they come from clamped duplicate rows and are replaced by zeros,
    # which is exactly conv2's zero padding).
    top = _fuse_dx(conv1(xt_ref[0, 0]).reshape(1, W, Cb))     # (1, W, 3*Cb) bf16
    bot = _fuse_dx(conv1(xb_ref[0, 0]).reshape(1, W, Cb))
    zrow = jnp.zeros((1, W, 3 * Cb), jnp.bfloat16)

    @pl.when(j > 0)
    def _():
        h1p_ref[0:1] = top

    @pl.when(j == 0)
    def _():
        h1p_ref[0:1] = zrow

    @pl.when(j < nj - 1)
    def _():
        h1p_ref[R - 1:R] = bot

    @pl.when(j == nj - 1)
    def _():
        h1p_ref[R - 1:R] = zrow

    # ---- conv2 (3x3, pad=1) + bn2 + relu: 3 matmuls with K = 3*Cb -----------
    acc = None
    for dy in range(3):
        # Leading-dim ref slice -> contiguous value -> free reshape (no copy).
        lhs = h1p_ref[dy:dy + TH].reshape(TH * W, 3 * Cb)     # bf16
        part = jnp.dot(lhs, w2f_ref[dy], preferred_element_type=jnp.float32)
        acc = part if acc is None else acc + part
    h2 = jnp.maximum(acc * s2_ref[...] + b2_ref[...], 0.0)    # (TH*W, Cb) f32

    # ---- conv3 (1x1) + bn3 + residual add + relu ----------------------------
    h3 = jnp.dot(h2.astype(jnp.bfloat16), w3_ref[...],
                 preferred_element_type=jnp.float32)
    h3 = h3 * s3_ref[...] + b3_ref[...]
    out = jnp.maximum(h3 + x_main.reshape(TH * W, Cin), 0.0)  # f32 residual
    out_ref[...] = out.reshape(1, TH, W, Cout).astype(out_ref.dtype)


def _pick_tile_h(N, H, W, Cin, Cb, Cout, budget_bytes=24 << 20):
    """Largest divisor of H whose pipeline footprint fits the budget (safe for
    v7x's 64 MiB VMEM with 48 MiB scoped limit; generous on v5e/v6e), while
    keeping >= 2 parallel grid steps when possible (v7x has 2 TensorCores)."""
    def footprint(th):
        io = 2 * ((th + 2) * W * Cin + th * W * Cout) * 4    # dbl-buffered f32 I/O blocks
        scratch = (th + 2) * W * 3 * Cb * 2                  # bf16 fused conv2 scratch
        live = th * W * (3 * Cb * 4 + Cb * 4)                # fused build + f32 conv2 acc
        return io + scratch + live

    divs = [d for d in range(H, 0, -1) if H % d == 0]
    fits = [th for th in divs if footprint(th) <= budget_bytes]
    if not fits:
        return 1
    for th in fits:
        if N * (H // th) >= 2:
            return th
    return fits[0]


def bottleneck_pallas(x_nhwc, params, tile_h=None):
    """x_nhwc: (N, H, W, Cin) float32.  Returns (N, H, W, Cout), Cout == Cin."""
    w1, s1, b1, w2, s2, b2, w3, s3, b3 = params
    N, H, W, Cin = x_nhwc.shape
    Cb = w1.shape[1]
    Cout = w3.shape[1]
    assert Cin == Cout, "identity residual requires inplanes == planes"

    TH = _pick_tile_h(N, H, W, Cin, Cb, Cout) if tile_h is None else tile_h
    if H % TH != 0:
        raise ValueError(f"H={H} must be divisible by tile_h={TH}")
    nj = H // TH

    # Weights in bf16 for the MXU; folded BN scale/bias stay f32.
    # w2 (3,3,Cb,Cb) HWIO -> (3, 3*Cb, Cb): dy outer, dx-major rows (matches _fuse_dx lanes).
    w1b = w1.astype(jnp.bfloat16)
    w2f = w2.astype(jnp.bfloat16).reshape(3, 3 * Cb, Cb)
    w3b = w3.astype(jnp.bfloat16)

    def x_top_map(n, j):             # 1-row halo above (clamped; zeroed in-kernel)
        return (n, jnp.maximum(j * TH - 1, 0), 0, 0)

    def x_main_map(n, j):
        return (n, j, 0, 0)

    def x_bot_map(n, j):             # 1-row halo below (clamped; zeroed in-kernel)
        return (n, jnp.minimum(j * TH + TH, H - 1), 0, 0)

    def resident(shape):             # full array, constant block -> stays in VMEM
        nd = len(shape)
        return pl.BlockSpec(shape, lambda n, j, _nd=nd: (0,) * _nd)

    in_specs = [
        pl.BlockSpec((1, 1, W, Cin), x_top_map),
        pl.BlockSpec((1, TH, W, Cin), x_main_map),
        pl.BlockSpec((1, 1, W, Cin), x_bot_map),
        resident(w1b.shape), resident(s1.shape), resident(b1.shape),
        resident(w2f.shape), resident(s2.shape), resident(b2.shape),
        resident(w3b.shape), resident(s3.shape), resident(b3.shape),
    ]
    out_specs = pl.BlockSpec((1, TH, W, Cout), lambda n, j: (n, j, 0, 0))

    return pl.pallas_call(
        bottleneck_kernel,
        out_shape=jax.ShapeDtypeStruct((N, H, W, Cout), x_nhwc.dtype),
        grid=(N, nj),
        in_specs=in_specs,
        out_specs=out_specs,
        scratch_shapes=[pltpu.VMEM((TH + 2, W, 3 * Cb), jnp.bfloat16)],
        compiler_params=pltpu.CompilerParams(
            dimension_semantics=("parallel", "parallel"),
            vmem_limit_bytes=48 * 1024 * 1024),
    )(x_nhwc, x_nhwc, x_nhwc, w1b, s1, b1, w2f, s2, b2, w3b, s3, b3)


# ----------------------------------------------------------------------------
# Parameter construction (deterministic, in-script)
# ----------------------------------------------------------------------------
def make_params(key, inplanes, planes):
    expansion = 2
    bottle = planes // expansion
    ks = jax.random.split(key, 15)

    def bn_fold(kw, kb, km, kv, n):
        w = jax.random.uniform(kw, (n,), minval=0.5, maxval=1.5)
        b = 0.1 * jax.random.normal(kb, (n,))
        rm = 0.1 * jax.random.normal(km, (n,))
        rv = jax.random.uniform(kv, (n,), minval=0.5, maxval=1.5)
        eps = 1e-5
        scale = w * lax.rsqrt(rv + eps)
        bias = b - rm * scale
        return (scale.reshape(1, n).astype(jnp.float32),
                bias.reshape(1, n).astype(jnp.float32))

    # conv weights in matmul-friendly layouts:
    #   w1: (Cin, Cb)   w2: (3, 3, Cb, Cb) [HWIO]   w3: (Cb, Cout)
    w1 = 0.1 * jax.random.normal(ks[0], (inplanes, bottle), dtype=jnp.float32)
    w2 = 0.1 * jax.random.normal(ks[1], (3, 3, bottle, bottle), dtype=jnp.float32)
    w3 = 0.1 * jax.random.normal(ks[2], (bottle, planes), dtype=jnp.float32)
    s1, b1 = bn_fold(ks[3], ks[4], ks[5], ks[6], bottle)
    s2, b2 = bn_fold(ks[7], ks[8], ks[9], ks[10], bottle)
    s3, b3 = bn_fold(ks[11], ks[12], ks[13], ks[14], planes)
    return (w1, s1, b1, w2, s2, b2, w3, s3, b3)


# ----------------------------------------------------------------------------
# Pure-JAX reference (for verification), NHWC
# ----------------------------------------------------------------------------
def bottleneck_ref(x_nhwc, params):
    (w1, s1, b1, w2, s2, b2, w3, s3, b3) = params
    dn = ('NHWC', 'HWIO', 'NHWC')

    h = lax.conv_general_dilated(x_nhwc, w1.reshape(1, 1, *w1.shape), (1, 1),
                                 'VALID', dimension_numbers=dn)
    h = jnp.maximum(h * s1.reshape(1, 1, 1, -1) + b1.reshape(1, 1, 1, -1), 0.0)
    h = lax.conv_general_dilated(h, w2, (1, 1), [(1, 1), (1, 1)],
                                 dimension_numbers=dn)
    h = jnp.maximum(h * s2.reshape(1, 1, 1, -1) + b2.reshape(1, 1, 1, -1), 0.0)
    h = lax.conv_general_dilated(h, w3.reshape(1, 1, *w3.shape), (1, 1),
                                 'VALID', dimension_numbers=dn)
    h = h * s3.reshape(1, 1, 1, -1) + b3.reshape(1, 1, 1, -1)
    return jnp.maximum(h + x_nhwc, 0.0)


if __name__ == "__main__":
    key = jax.random.PRNGKey(0)
    k_x, k_p = jax.random.split(key)

    # NHWC activations; inplanes == planes so the identity residual applies.
    N, H, W, C = 2, 16, 16, 16
    x = jax.random.normal(k_x, (N, H, W, C), dtype=jnp.float32)
    params = make_params(k_p, inplanes=C, planes=C)

    out = bottleneck_pallas(x, params)
    out = jax.block_until_ready(out)

    ref = bottleneck_ref(x, params)
    assert out.shape == ref.shape == (N, H, W, C)
    # bf16 MXU operands with f32 accumulation -> bf16-level comparison tolerance.
    assert jnp.allclose(out, ref, rtol=3e-2, atol=3e-2), "mismatch vs reference"

    print("KERNEL_OK")
</pallas_src>

<mosaic_0001>
module attributes {stable_mosaic.version = 11 : i64} {
  func.func @bottleneck_kernel(%arg0: i32, %arg1: i32, %arg2: memref<1x1x16x16xf32, #tpu.memory_space<vmem>>, %arg3: memref<1x16x16x16xf32, #tpu.memory_space<vmem>>, %arg4: memref<1x1x16x16xf32, #tpu.memory_space<vmem>>, %arg5: memref<16x8xbf16, #tpu.memory_space<vmem>>, %arg6: memref<1x8xf32, #tpu.memory_space<vmem>>, %arg7: memref<1x8xf32, #tpu.memory_space<vmem>>, %arg8: memref<3x24x8xbf16, #tpu.memory_space<vmem>>, %arg9: memref<1x8xf32, #tpu.memory_space<vmem>>, %arg10: memref<1x8xf32, #tpu.memory_space<vmem>>, %arg11: memref<8x16xbf16, #tpu.memory_space<vmem>>, %arg12: memref<1x16xf32, #tpu.memory_space<vmem>>, %arg13: memref<1x16xf32, #tpu.memory_space<vmem>>, %arg14: memref<1x16x16x16xf32, #tpu.memory_space<vmem>>, %arg15: memref<18x16x24xbf16, #tpu.memory_space<vmem>>) attributes {dimension_semantics = [#tpu.dimension_semantics<parallel>, #tpu.dimension_semantics<parallel>], iteration_bounds = array<i64: 2, 1>, scalar_prefetch = 0 : i64, scratch_operands = 1 : i64, tpu.core_type = #tpu.core_type<tc>, window_params = [{transform_indices = @transform_0, window_bounds = array<i64: 1, 1, 16, 16>}, {transform_indices = @transform_1, window_bounds = array<i64: 1, 16, 16, 16>}, {transform_indices = @transform_2, window_bounds = array<i64: 1, 1, 16, 16>}, {pipeline_mode = #tpu.pipeline_mode<synchronous>, transform_indices = @transform_3, window_bounds = array<i64: 16, 8>}, {pipeline_mode = #tpu.pipeline_mode<synchronous>, transform_indices = @transform_4, window_bounds = array<i64: 1, 8>}, {pipeline_mode = #tpu.pipeline_mode<synchronous>, transform_indices = @transform_5, window_bounds = array<i64: 1, 8>}, {pipeline_mode = #tpu.pipeline_mode<synchronous>, transform_indices = @transform_6, window_bounds = array<i64: 3, 24, 8>}, {pipeline_mode = #tpu.pipeline_mode<synchronous>, transform_indices = @transform_7, window_bounds = array<i64: 1, 8>}, {pipeline_mode = #tpu.pipeline_mode<synchronous>, transform_indices = @transform_8, window_bounds = array<i64: 1, 8>}, {pipeline_mode = #tpu.pipeline_mode<synchronous>, transform_indices = @transform_9, window_bounds = array<i64: 8, 16>}, {pipeline_mode = #tpu.pipeline_mode<synchronous>, transform_indices = @transform_10, window_bounds = array<i64: 1, 16>}, {pipeline_mode = #tpu.pipeline_mode<synchronous>, transform_indices = @transform_11, window_bounds = array<i64: 1, 16>}, {transform_indices = @transform_12, window_bounds = array<i64: 1, 16, 16, 16>}]} {
    %c0 = arith.constant 0 : index
    %c0_0 = arith.constant 0 : index
    %c0_1 = arith.constant 0 : index
    %c0_2 = arith.constant 0 : index
    %0 = vector.load %arg3[%c0, %c0_0, %c0_1, %c0_2] : memref<1x16x16x16xf32, #tpu.memory_space<vmem>>, vector<1x16x16x16xf32>
    %1 = vector.shape_cast %0 : vector<1x16x16x16xf32> to vector<16x16x16xf32>
    %2 = vector.shape_cast %1 : vector<16x16x16xf32> to vector<256x16xf32>
    %3 = arith.truncf %2 : vector<256x16xf32> to vector<256x16xbf16>
    %c0_3 = arith.constant 0 : index
    %c0_4 = arith.constant 0 : index
    %4 = vector.load %arg5[%c0_3, %c0_4] : memref<16x8xbf16, #tpu.memory_space<vmem>>, vector<16x8xbf16>
    %cst = arith.constant dense<0.000000e+00> : vector<256x8xf32>
    %5 = tpu.matmul %3, %4, %cst {dimension_numbers = #tpu.dot_dimension_numbers<[1], [0], [0], [1], [0, 0, 1, 1], [], []>} : vector<256x16xbf16>, vector<16x8xbf16>, vector<256x8xf32> -> vector<256x8xf32>
    %c0_5 = arith.constant 0 : index
    %c0_6 = arith.constant 0 : index
    %6 = vector.load %arg6[%c0_5, %c0_6] : memref<1x8xf32, #tpu.memory_space<vmem>>, vector<1x8xf32>
    %7 = vector.broadcast %6 : vector<1x8xf32> to vector<256x8xf32>
    %8 = arith.mulf %5, %7 : vector<256x8xf32>
    %c0_7 = arith.constant 0 : index
    %c0_8 = arith.constant 0 : index
    %9 = vector.load %arg7[%c0_7, %c0_8] : memref<1x8xf32, #tpu.memory_space<vmem>>, vector<1x8xf32>
    %10 = vector.broadcast %9 : vector<1x8xf32> to vector<256x8xf32>
    %11 = arith.addf %8, %10 : vector<256x8xf32>
    %cst_9 = arith.constant 0.000000e+00 : f32
    %12 = vector.broadcast %cst_9 : f32 to vector<256x8xf32>
    %13 = arith.maximumf %11, %12 : vector<256x8xf32>
    %14 = vector.shape_cast %13 : vector<256x8xf32> to vector<16x16x8xf32>
    %cst_10 = arith.constant 0.000000e+00 : f32
    %15 = vector.broadcast %cst_10 : f32 to vector<16x1x8xf32>
    %16 = vector.extract_strided_slice %14 {offsets = [0, 0, 0], sizes = [16, 15, 8], strides = [1, 1, 1]} : vector<16x16x8xf32> to vector<16x15x8xf32>
    %17 = tpu.concatenate %15, %16 in 1 : vector<16x1x8xf32>, vector<16x15x8xf32> -> vector<16x16x8xf32>
    %18 = vector.extract_strided_slice %14 {offsets = [0, 1, 0], sizes = [16, 15, 8], strides = [1, 1, 1]} : vector<16x16x8xf32> to vector<16x15x8xf32>
    %19 = tpu.concatenate %18, %15 in 1 : vector<16x15x8xf32>, vector<16x1x8xf32> -> vector<16x16x8xf32>
    %20 = tpu.concatenate %17, %14, %19 in 2 : vector<16x16x8xf32>, vector<16x16x8xf32>, vector<16x16x8xf32> -> vector<16x16x24xf32>
    %21 = arith.truncf %20 : vector<16x16x24xf32> to vector<16x16x24xbf16>
    %c1 = arith.constant 1 : index
    %c0_11 = arith.constant 0 : index
    %c0_12 = arith.constant 0 : index
    %22 = vector.load %arg15[%c1, %c0_11, %c0_12] : memref<18x16x24xbf16, #tpu.memory_space<vmem>>, vector<16x16x24xbf16>
    tpu.vector_store %arg15[%c1, %c0_11, %c0_12], %21 {strides = array<i32>} : memref<18x16x24xbf16, #tpu.memory_space<vmem>>, vector<16x16x24xbf16>,
    %c0_13 = arith.constant 0 : index
    %c0_14 = arith.constant 0 : index
    %c0_15 = arith.constant 0 : index
    %c0_16 = arith.constant 0 : index
    %23 = vector.load %arg2[%c0_13, %c0_14, %c0_15, %c0_16] : memref<1x1x16x16xf32, #tpu.memory_space<vmem>>, vector<1x1x16x16xf32>
    %24 = vector.shape_cast %23 : vector<1x1x16x16xf32> to vector<16x16xf32>
    %25 = arith.truncf %24 : vector<16x16xf32> to vector<16x16xbf16>
    %c0_17 = arith.constant 0 : index
    %c0_18 = arith.constant 0 : index
    %26 = vector.load %arg5[%c0_17, %c0_18] : memref<16x8xbf16, #tpu.memory_space<vmem>>, vector<16x8xbf16>
    %cst_19 = arith.constant dense<0.000000e+00> : vector<16x8xf32>
    %27 = tpu.matmul %25, %26, %cst_19 {dimension_numbers = #tpu.dot_dimension_numbers<[1], [0], [0], [1], [0, 0, 1, 1], [], []>} : vector<16x16xbf16>, vector<16x8xbf16>, vector<16x8xf32> -> vector<16x8xf32>
    %c0_20 = arith.constant 0 : index
    %c0_21 = arith.constant 0 : index
    %28 = vector.load %arg6[%c0_20, %c0_21] : memref<1x8xf32, #tpu.memory_space<vmem>>, vector<1x8xf32>
    %29 = vector.broadcast %28 : vector<1x8xf32> to vector<16x8xf32>
    %30 = arith.mulf %27, %29 : vector<16x8xf32>
    %c0_22 = arith.constant 0 : index
    %c0_23 = arith.constant 0 : index
    %31 = vector.load %arg7[%c0_22, %c0_23] : memref<1x8xf32, #tpu.memory_space<vmem>>, vector<1x8xf32>
    %32 = vector.broadcast %31 : vector<1x8xf32> to vector<16x8xf32>
    %33 = arith.addf %30, %32 : vector<16x8xf32>
    %cst_24 = arith.constant 0.000000e+00 : f32
    %34 = vector.broadcast %cst_24 : f32 to vector<16x8xf32>
    %35 = arith.maximumf %33, %34 : vector<16x8xf32>
    %36 = vector.shape_cast %35 : vector<16x8xf32> to vector<1x16x8xf32>
    %cst_25 = arith.constant 0.000000e+00 : f32
    %37 = vector.broadcast %cst_25 : f32 to vector<1x1x8xf32>
    %38 = vector.extract_strided_slice %36 {offsets = [0, 0, 0], sizes = [1, 15, 8], strides = [1, 1, 1]} : vector<1x16x8xf32> to vector<1x15x8xf32>
    %39 = tpu.concatenate %37, %38 in 1 : vector<1x1x8xf32>, vector<1x15x8xf32> -> vector<1x16x8xf32>
    %40 = vector.extract_strided_slice %36 {offsets = [0, 1, 0], sizes = [1, 15, 8], strides = [1, 1, 1]} : vector<1x16x8xf32> to vector<1x15x8xf32>
    %41 = tpu.concatenate %40, %37 in 1 : vector<1x15x8xf32>, vector<1x1x8xf32> -> vector<1x16x8xf32>
    %42 = tpu.concatenate %39, %36, %41 in 2 : vector<1x16x8xf32>, vector<1x16x8xf32>, vector<1x16x8xf32> -> vector<1x16x24xf32>
    %43 = arith.truncf %42 : vector<1x16x24xf32> to vector<1x16x24xbf16>
    %c0_26 = arith.constant 0 : index
    %c0_27 = arith.constant 0 : index
    %c0_28 = arith.constant 0 : index
    %c0_29 = arith.constant 0 : index
    %44 = vector.load %arg4[%c0_26, %c0_27, %c0_28, %c0_29] : memref<1x1x16x16xf32, #tpu.memory_space<vmem>>, vector<1x1x16x16xf32>
    %45 = vector.shape_cast %44 : vector<1x1x16x16xf32> to vector<16x16xf32>
    %46 = arith.truncf %45 : vector<16x16xf32> to vector<16x16xbf16>
    %c0_30 = arith.constant 0 : index
    %c0_31 = arith.constant 0 : index
    %47 = vector.load %arg5[%c0_30, %c0_31] : memref<16x8xbf16, #tpu.memory_space<vmem>>, vector<16x8xbf16>
    %cst_32 = arith.constant dense<0.000000e+00> : vector<16x8xf32>
    %48 = tpu.matmul %46, %47, %cst_32 {dimension_numbers = #tpu.dot_dimension_numbers<[1], [0], [0], [1], [0, 0, 1, 1], [], []>} : vector<16x16xbf16>, vector<16x8xbf16>, vector<16x8xf32> -> vector<16x8xf32>
    %c0_33 = arith.constant 0 : index
    %c0_34 = arith.constant 0 : index
    %49 = vector.load %arg6[%c0_33, %c0_34] : memref<1x8xf32, #tpu.memory_space<vmem>>, vector<1x8xf32>
    %50 = vector.broadcast %49 : vector<1x8xf32> to vector<16x8xf32>
    %51 = arith.mulf %48, %50 : vector<16x8xf32>
    %c0_35 = arith.constant 0 : index
    %c0_36 = arith.constant 0 : index
    %52 = vector.load %arg7[%c0_35, %c0_36] : memref<1x8xf32, #tpu.memory_space<vmem>>, vector<1x8xf32>
    %53 = vector.broadcast %52 : vector<1x8xf32> to vector<16x8xf32>
    %54 = arith.addf %51, %53 : vector<16x8xf32>
    %cst_37 = arith.constant 0.000000e+00 : f32
    %55 = vector.broadcast %cst_37 : f32 to vector<16x8xf32>
    %56 = arith.maximumf %54, %55 : vector<16x8xf32>
    %57 = vector.shape_cast %56 : vector<16x8xf32> to vector<1x16x8xf32>
    %cst_38 = arith.constant 0.000000e+00 : f32
    %58 = vector.broadcast %cst_38 : f32 to vector<1x1x8xf32>
    %59 = vector.extract_strided_slice %57 {offsets = [0, 0, 0], sizes = [1, 15, 8], strides = [1, 1, 1]} : vector<1x16x8xf32> to vector<1x15x8xf32>
    %60 = tpu.concatenate %58, %59 in 1 : vector<1x1x8xf32>, vector<1x15x8xf32> -> vector<1x16x8xf32>
    %61 = vector.extract_strided_slice %57 {offsets = [0, 1, 0], sizes = [1, 15, 8], strides = [1, 1, 1]} : vector<1x16x8xf32> to vector<1x15x8xf32>
    %62 = tpu.concatenate %61, %58 in 1 : vector<1x15x8xf32>, vector<1x1x8xf32> -> vector<1x16x8xf32>
    %63 = tpu.concatenate %60, %57, %62 in 2 : vector<1x16x8xf32>, vector<1x16x8xf32>, vector<1x16x8xf32> -> vector<1x16x24xf32>
    %64 = arith.truncf %63 : vector<1x16x24xf32> to vector<1x16x24xbf16>
    %cst_39 = arith.constant 0.000000e+00 : bf16
    %65 = vector.broadcast %cst_39 : bf16 to vector<1x16x24xbf16>
    %c0_i32 = arith.constant 0 : i32
    %66 = arith.cmpi sgt, %arg1, %c0_i32 : i32
    %67 = arith.extui %66 : i1 to i32
    %c0_i32_40 = arith.constant 0 : i32
    %68 = arith.cmpi ne, %67, %c0_i32_40 : i32
    scf.if %68 {
      %c0_84 = arith.constant 0 : index
      %c0_85 = arith.constant 0 : index
      %c0_86 = arith.constant 0 : index
      %118 = vector.load %arg15[%c0_84, %c0_85, %c0_86] : memref<18x16x24xbf16, #tpu.memory_space<vmem>>, vector<1x16x24xbf16>
      tpu.vector_store %arg15[%c0_84, %c0_85, %c0_86], %43 {strides = array<i32>} : memref<18x16x24xbf16, #tpu.memory_space<vmem>>, vector<1x16x24xbf16>,
    } else {
    }
    %c0_i32_41 = arith.constant 0 : i32
    %69 = arith.cmpi eq, %arg1, %c0_i32_41 : i32
    %70 = arith.extui %69 : i1 to i32
    %c0_i32_42 = arith.constant 0 : i32
    %71 = arith.cmpi ne, %70, %c0_i32_42 : i32
    scf.if %71 {
      %c0_84 = arith.constant 0 : index
      %c0_85 = arith.constant 0 : index
      %c0_86 = arith.constant 0 : index
      %118 = vector.load %arg15[%c0_84, %c0_85, %c0_86] : memref<18x16x24xbf16, #tpu.memory_space<vmem>>, vector<1x16x24xbf16>
      tpu.vector_store %arg15[%c0_84, %c0_85, %c0_86], %65 {strides = array<i32>} : memref<18x16x24xbf16, #tpu.memory_space<vmem>>, vector<1x16x24xbf16>,
    } else {
    }
    %c0_i32_43 = arith.constant 0 : i32
    %72 = arith.cmpi slt, %arg1, %c0_i32_43 : i32
    %73 = arith.extui %72 : i1 to i32
    %c0_i32_44 = arith.constant 0 : i32
    %74 = arith.cmpi ne, %73, %c0_i32_44 : i32
    scf.if %74 {
      %c17 = arith.constant 17 : index
      %c0_84 = arith.constant 0 : index
      %c0_85 = arith.constant 0 : index
      %118 = vector.load %arg15[%c17, %c0_84, %c0_85] : memref<18x16x24xbf16, #tpu.memory_space<vmem>>, vector<1x16x24xbf16>
      tpu.vector_store %arg15[%c17, %c0_84, %c0_85], %64 {strides = array<i32>} : memref<18x16x24xbf16, #tpu.memory_space<vmem>>, vector<1x16x24xbf16>,
    } else {
    }
    %c0_i32_45 = arith.constant 0 : i32
    %75 = arith.cmpi eq, %arg1, %c0_i32_45 : i32
    %76 = arith.extui %75 : i1 to i32
    %c0_i32_46 = arith.constant 0 : i32
    %77 = arith.cmpi ne, %76, %c0_i32_46 : i32
    scf.if %77 {
      %c17 = arith.constant 17 : index
      %c0_84 = arith.constant 0 : index
      %c0_85 = arith.constant 0 : index
      %118 = vector.load %arg15[%c17, %c0_84, %c0_85] : memref<18x16x24xbf16, #tpu.memory_space<vmem>>, vector<1x16x24xbf16>
      tpu.vector_store %arg15[%c17, %c0_84, %c0_85], %65 {strides = array<i32>} : memref<18x16x24xbf16, #tpu.memory_space<vmem>>, vector<1x16x24xbf16>,
    } else {
    }
    %c0_47 = arith.constant 0 : index
    %c0_48 = arith.constant 0 : index
    %c0_49 = arith.constant 0 : index
    %78 = vector.load %arg15[%c0_47, %c0_48, %c0_49] : memref<18x16x24xbf16, #tpu.memory_space<vmem>>, vector<16x16x24xbf16>
    %79 = vector.shape_cast %78 : vector<16x16x24xbf16> to vector<256x24xbf16>
    %c0_50 = arith.constant 0 : index
    %c0_51 = arith.constant 0 : index
    %c0_52 = arith.constant 0 : index
    %80 = vector.load %arg8[%c0_50, %c0_51, %c0_52] : memref<3x24x8xbf16, #tpu.memory_space<vmem>>, vector<1x24x8xbf16>
    %81 = vector.shape_cast %80 : vector<1x24x8xbf16> to vector<24x8xbf16>
    %cst_53 = arith.constant dense<0.000000e+00> : vector<256x8xf32>
    %82 = tpu.matmul %79, %81, %cst_53 {dimension_numbers = #tpu.dot_dimension_numbers<[1], [0], [0], [1], [0, 0, 1, 1], [], []>} : vector<256x24xbf16>, vector<24x8xbf16>, vector<256x8xf32> -> vector<256x8xf32>
    %c1_54 = arith.constant 1 : index
    %c0_55 = arith.constant 0 : index
    %c0_56 = arith.constant 0 : index
    %83 = vector.load %arg15[%c1_54, %c0_55, %c0_56] : memref<18x16x24xbf16, #tpu.memory_space<vmem>>, vector<16x16x24xbf16>
    %84 = vector.shape_cast %83 : vector<16x16x24xbf16> to vector<256x24xbf16>
    %c1_57 = arith.constant 1 : index
    %c0_58 = arith.constant 0 : index
    %c0_59 = arith.constant 0 : index
    %85 = vector.load %arg8[%c1_57, %c0_58, %c0_59] : memref<3x24x8xbf16, #tpu.memory_space<vmem>>, vector<1x24x8xbf16>
    %86 = vector.shape_cast %85 : vector<1x24x8xbf16> to vector<24x8xbf16>
    %cst_60 = arith.constant dense<0.000000e+00> : vector<256x8xf32>
    %87 = tpu.matmul %84, %86, %cst_60 {dimension_numbers = #tpu.dot_dimension_numbers<[1], [0], [0], [1], [0, 0, 1, 1], [], []>} : vector<256x24xbf16>, vector<24x8xbf16>, vector<256x8xf32> -> vector<256x8xf32>
    %88 = arith.addf %82, %87 : vector<256x8xf32>
    %c2 = arith.constant 2 : index
    %c0_61 = arith.constant 0 : index
    %c0_62 = arith.constant 0 : index
    %89 = vector.load %arg15[%c2, %c0_61, %c0_62] : memref<18x16x24xbf16, #tpu.memory_space<vmem>>, vector<16x16x24xbf16>
    %90 = vector.shape_cast %89 : vector<16x16x24xbf16> to vector<256x24xbf16>
    %c2_63 = arith.constant 2 : index
    %c0_64 = arith.constant 0 : index
    %c0_65 = arith.constant 0 : index
    %91 = vector.load %arg8[%c2_63, %c0_64, %c0_65] : memref<3x24x8xbf16, #tpu.memory_space<vmem>>, vector<1x24x8xbf16>
    %92 = vector.shape_cast %91 : vector<1x24x8xbf16> to vector<24x8xbf16>
    %cst_66 = arith.constant dense<0.000000e+00> : vector<256x8xf32>
    %93 = tpu.matmul %90, %92, %cst_66 {dimension_numbers = #tpu.dot_dimension_numbers<[1], [0], [0], [1], [0, 0, 1, 1], [], []>} : vector<256x24xbf16>, vector<24x8xbf16>, vector<256x8xf32> -> vector<256x8xf32>
    %94 = arith.addf %88, %93 : vector<256x8xf32>
    %c0_67 = arith.constant 0 : index
    %c0_68 = arith.constant 0 : index
    %95 = vector.load %arg9[%c0_67, %c0_68] : memref<1x8xf32, #tpu.memory_space<vmem>>, vector<1x8xf32>
    %96 = vector.broadcast %95 : vector<1x8xf32> to vector<256x8xf32>
    %97 = arith.mulf %94, %96 : vector<256x8xf32>
    %c0_69 = arith.constant 0 : index
    %c0_70 = arith.constant 0 : index
    %98 = vector.load %arg10[%c0_69, %c0_70] : memref<1x8xf32, #tpu.memory_space<vmem>>, vector<1x8xf32>
    %99 = vector.broadcast %98 : vector<1x8xf32> to vector<256x8xf32>
    %100 = arith.addf %97, %99 : vector<256x8xf32>
    %cst_71 = arith.constant 0.000000e+00 : f32
    %101 = vector.broadcast %cst_71 : f32 to vector<256x8xf32>
    %102 = arith.maximumf %100, %101 : vector<256x8xf32>
    %103 = arith.truncf %102 : vector<256x8xf32> to vector<256x8xbf16>
    %c0_72 = arith.constant 0 : index
    %c0_73 = arith.constant 0 : index
    %104 = vector.load %arg11[%c0_72, %c0_73] : memref<8x16xbf16, #tpu.memory_space<vmem>>, vector<8x16xbf16>
    %cst_74 = arith.constant dense<0.000000e+00> : vector<256x16xf32>
    %105 = tpu.matmul %103, %104, %cst_74 {dimension_numbers = #tpu.dot_dimension_numbers<[1], [0], [0], [1], [0, 0, 1, 1], [], []>} : vector<256x8xbf16>, vector<8x16xbf16>, vector<256x16xf32> -> vector<256x16xf32>
    %c0_75 = arith.constant 0 : index
    %c0_76 = arith.constant 0 : index
    %106 = vector.load %arg12[%c0_75, %c0_76] : memref<1x16xf32, #tpu.memory_space<vmem>>, vector<1x16xf32>
    %107 = vector.broadcast %106 : vector<1x16xf32> to vector<256x16xf32>
    %108 = arith.mulf %105, %107 : vector<256x16xf32>
    %c0_77 = arith.constant 0 : index
    %c0_78 = arith.constant 0 : index
    %109 = vector.load %arg13[%c0_77, %c0_78] : memref<1x16xf32, #tpu.memory_space<vmem>>, vector<1x16xf32>
    %110 = vector.broadcast %109 : vector<1x16xf32> to vector<256x16xf32>
    %111 = arith.addf %108, %110 : vector<256x16xf32>
    %112 = vector.shape_cast %1 : vector<16x16x16xf32> to vector<256x16xf32>
    %113 = arith.addf %111, %112 : vector<256x16xf32>
    %cst_79 = arith.constant 0.000000e+00 : f32
    %114 = vector.broadcast %cst_79 : f32 to vector<256x16xf32>
    %115 = arith.maximumf %113, %114 : vector<256x16xf32>
    %116 = vector.shape_cast %115 : vector<256x16xf32> to vector<1x16x16x16xf32>
    %c0_80 = arith.constant 0 : index
    %c0_81 = arith.constant 0 : index
    %c0_82 = arith.constant 0 : index
    %c0_83 = arith.constant 0 : index
    %117 = vector.load %arg14[%c0_80, %c0_81, %c0_82, %c0_83] : memref<1x16x16x16xf32, #tpu.memory_space<vmem>>, vector<1x16x16x16xf32>
    tpu.vector_store %arg14[%c0_80, %c0_81, %c0_82, %c0_83], %116 {strides = array<i32>} : memref<1x16x16x16xf32, #tpu.memory_space<vmem>>, vector<1x16x16x16xf32>,
    return
  }
  func.func @transform_0(%arg0: i32, %arg1: i32) -> (i32, i32, i32, i32) {
    %c16_i32 = arith.constant 16 : i32
    %0 = arith.muli %arg1, %c16_i32 : i32
    %c1_i32 = arith.constant 1 : i32
    %1 = arith.subi %0, %c1_i32 : i32
    %c0_i32 = arith.constant 0 : i32
    %2 = arith.maxsi %1, %c0_i32 : i32
    %c0_i32_0 = arith.constant 0 : i32
    %c0_i32_1 = arith.constant 0 : i32
    %c0_i32_2 = arith.constant 0 : i32
    return %arg0, %2, %c0_i32_0, %c0_i32_1 : i32, i32, i32, i32
  }
  func.func @transform_1(%arg0: i32, %arg1: i32) -> (i32, i32, i32, i32) {
    %c0_i32 = arith.constant 0 : i32
    %c0_i32_0 = arith.constant 0 : i32
    %c0_i32_1 = arith.constant 0 : i32
    return %arg0, %arg1, %c0_i32, %c0_i32_0 : i32, i32, i32, i32
  }
  func.func @transform_2(%arg0: i32, %arg1: i32) -> (i32, i32, i32, i32) {
    %c16_i32 = arith.constant 16 : i32
    %0 = arith.muli %arg1, %c16_i32 : i32
    %c16_i32_0 = arith.constant 16 : i32
    %1 = arith.addi %0, %c16_i32_0 : i32
    %c15_i32 = arith.constant 15 : i32
    %2 = arith.minsi %1, %c15_i32 : i32
    %c0_i32 = arith.constant 0 : i32
    %c0_i32_1 = arith.constant 0 : i32
    %c0_i32_2 = arith.constant 0 : i32
    return %arg0, %2, %c0_i32, %c0_i32_1 : i32, i32, i32, i32
  }
  func.func @transform_3(%arg0: i32, %arg1: i32) -> (i32, i32) {
    %c0_i32 = arith.constant 0 : i32
    %c0_i32_0 = arith.constant 0 : i32
    %c0_i32_1 = arith.constant 0 : i32
    return %c0_i32, %c0_i32_0 : i32, i32
  }
  func.func @transform_4(%arg0: i32, %arg1: i32) -> (i32, i32) {
    %c0_i32 = arith.constant 0 : i32
    %c0_i32_0 = arith.constant 0 : i32
    %c0_i32_1 = arith.constant 0 : i32
    return %c0_i32, %c0_i32_0 : i32, i32
  }
  func.func @transform_5(%arg0: i32, %arg1: i32) -> (i32, i32) {
    %c0_i32 = arith.constant 0 : i32
    %c0_i32_0 = arith.constant 0 : i32
    %c0_i32_1 = arith.constant 0 : i32
    return %c0_i32, %c0_i32_0 : i32, i32
  }
  func.func @transform_6(%arg0: i32, %arg1: i32) -> (i32, i32, i32) {
    %c0_i32 = arith.constant 0 : i32
    %c0_i32_0 = arith.constant 0 : i32
    %c0_i32_1 = arith.constant 0 : i32
    %c0_i32_2 = arith.constant 0 : i32
    return %c0_i32, %c0_i32_0, %c0_i32_1 : i32, i32, i32
  }
  func.func @transform_7(%arg0: i32, %arg1: i32) -> (i32, i32) {
    %c0_i32 = arith.constant 0 : i32
    %c0_i32_0 = arith.constant 0 : i32
    %c0_i32_1 = arith.constant 0 : i32
    return %c0_i32, %c0_i32_0 : i32, i32
  }
  func.func @transform_8(%arg0: i32, %arg1: i32) -> (i32, i32) {
    %c0_i32 = arith.constant 0 : i32
    %c0_i32_0 = arith.constant 0 : i32
    %c0_i32_1 = arith.constant 0 : i32
    return %c0_i32, %c0_i32_0 : i32, i32
  }
  func.func @transform_9(%arg0: i32, %arg1: i32) -> (i32, i32) {
    %c0_i32 = arith.constant 0 : i32
    %c0_i32_0 = arith.constant 0 : i32
    %c0_i32_1 = arith.constant 0 : i32
    return %c0_i32, %c0_i32_0 : i32, i32
  }
  func.func @transform_10(%arg0: i32, %arg1: i32) -> (i32, i32) {
    %c0_i32 = arith.constant 0 : i32
    %c0_i32_0 = arith.constant 0 : i32
    %c0_i32_1 = arith.constant 0 : i32
    return %c0_i32, %c0_i32_0 : i32, i32
  }
  func.func @transform_11(%arg0: i32, %arg1: i32) -> (i32, i32) {
    %c0_i32 = arith.constant 0 : i32
    %c0_i32_0 = arith.constant 0 : i32
    %c0_i32_1 = arith.constant 0 : i32
    return %c0_i32, %c0_i32_0 : i32, i32
  }
  func.func @transform_12(%arg0: i32, %arg1: i32) -> (i32, i32, i32, i32) {
    %c0_i32 = arith.constant 0 : i32
    %c0_i32_0 = arith.constant 0 : i32
    %c0_i32_1 = arith.constant 0 : i32
    return %arg0, %arg1, %c0_i32, %c0_i32_0 : i32, i32, i32, i32
  }
}

</mosaic_0001>

<bundles_post_ra>
// kernel: tpu_custom_call.1
= control target key start
LH: loop header
LB: loop body
LE: loop exit
PB: predicated region body
PF: predicated region fallthrough
CT: control target
= control target key end

     0   :  { %s5990_s0 = inlined_call_operand.hbm [shape: f32[2,16,16,16], index: 0, kind: input, shape index: {}]   ;;  %s5991_s1 = inlined_call_operand.hbm [shape: f32[2,16,16,16], index: 1, kind: input, shape index: {}]   ;;  %s5992_s2 = inlined_call_operand.hbm [shape: f32[2,16,16,16], index: 2, kind: input, shape index: {}]   ;;  %s5993_s3 = inlined_call_operand.vmem [shape: bf16[16,8], index: 3, kind: input, shape index: {}]   ;;  %s5994_s4 = inlined_call_operand.vmem [shape: f32[1,8], index: 4, kind: input, shape index: {}]   ;;  %s5995_s5 = inlined_call_operand.vmem [shape: f32[1,8], index: 5, kind: input, shape index: {}]   ;;  %s5996_s6 = inlined_call_operand.vmem [shape: bf16[3,24,8], index: 6, kind: input, shape index: {}]   ;;  %s5997_s7 = inlined_call_operand.vmem [shape: f32[1,8], index: 7, kind: input, shape index: {}]   ;;  %s5998_s8 = inlined_call_operand.vmem [shape: f32[1,8], index: 8, kind: input, shape index: {}]   ;;  %s5999_s9 = inlined_call_operand.vmem [shape: bf16[8,16], index: 9, kind: input, shape index: {}]   ;;  %s6000_s10 = inlined_call_operand.vmem [shape: f32[1,16], index: 10, kind: input, shape index: {}]   ;;  %s6001_s11 = inlined_call_operand.vmem [shape: f32[1,16], index: 11, kind: input, shape index: {}]   ;;  %s6002_s12 = inlined_call_operand.hbm [shape: f32[2,16,16,16], index: 12, kind: output, shape index: {}]  }
   0x1   :  { %6015 = sst [smem:[#allocation21_spill]] %s5991_s1 }
   0x2   :  { %6016 = sst [smem:[#allocation22_spill]] %s6000_s10 }
   0x3   :  { %6017 = sst [smem:[#allocation23_spill]] %s6001_s11 }
   0x4   :  { %6018 = sst [smem:[#allocation24_spill]] %s6002_s12 }
   0x5   :  { %17 = vsyncpa [#allocation4], 0 }
   0x6   :  { %19 = vsyncpa [#allocation4 + $0x1], 0 }
   0x7   :  { %20 = vsyncpa [#allocation7], 0 }
   0x8   :  { %22 = vsyncpa [#allocation7 + $0x1], 0 }
   0x9   :  { %23 = vsyncpa [#allocation5], 0 }
   0xa   :  { %25 = vsyncpa [#allocation5 + $0x1], 0  ;;  %s4646_s21 = smov 0   ;;  %s4648_s22 = smov 0  }
   0xb   :  { %s4650_s23 = smov 0   ;;  %s4652_s24 = smov 0  }
   0xc   :  { %s4654_s25 = smov 0   ;;  %s4656_s26 = smov 0  }
   0xd LB: > { %6019 = sst [smem:[#allocation13_spill]] %s4547_s21  ;;  %s4677_s27 = sadd.s32 4294967295, %s4567_s26   ;;  %s4567_s26 = sphi %s4656_s26, %s31_s26   ;;  %s4563_s25 = sphi %s4654_s25, %s6066_s25   ;;  %s4559_s24 = sphi %s4652_s24, %s6065_s24   ;;  %s4555_s23 = sphi %s4650_s23, %s6064_s23   ;;  %s4551_s22 = sphi %s4648_s22, %s6068_s22   ;;  %s4547_s21 = sphi %s4646_s21, %s6067_s21  }
   0xe   : > { %6020 = sst [smem:[#allocation14_spill]] %s4555_s23  ;;  %s3533_s28 = sadd.s32 4294967294, %s4567_s26  }
   0xf   : > { %6021 = sst [smem:[#allocation15_spill]] %s4559_s24  ;;  %s43_s29 = sadd.s32 1, %s4563_s25 }
  0x10   : > { %6022 = sst [smem:[#allocation16_spill]] %s4563_s25  ;;  %s60_s30 = sadd.s32 1, %s4555_s23 }
  0x11   : > { %p45_p0 = scmp.ge.s32.totalorder %s43_s29, 2  ;;  %p67_p1 = scmp.ne.s32.totalorder %s4555_s23, %s4551_s22 }
  0x12   : > { %p68_p2 = scmp.eq.s32.totalorder %s4567_s26, 0  ;;  %p73_p3 = scmp.ne.s32.totalorder %s4551_s22, %s4547_s21 }
  0x13   : > { %s6070_s29 = smov (%p45_p0, %s43_s29), 0  ;;  %p74_p5 = scmp.eq.s32.totalorder %s4677_s27, 0 }
  0x14   : > { %6023 = sst [smem:[#allocation17_spill]] %s6070_s29  ;;  %p4689_p4 = por %p68_p2, %p67_p1 }
  0x15   : > { %s55_s14 = ssub.s32 %s4563_s25, %s6070_s29  ;;  %p352_p6 = scmp.eq.s32.totalorder %s4677_s27, 1 }
  0x16   : > { %p58_p7 = scmp.eq.s32.totalorder %s55_s14, 0  ;;  %p4697_p8 = por %p74_p5, %p73_p3 }
  0x17   : > { %p4701_p9 = por %p352_p6, %p67_p1  ;;  %p358_p10 = scmp.eq.s32.totalorder %s3533_s28, 1 }
  0x18   : > { %s4706_s17 = scalar_select %p58_p7, %s4555_s23, %s60_s30  }
  0x19   : > { %s6026_s16 = scalar_select %p4701_p9, 1, 0 }
  0x1a   : > { %6028 = sst [smem:[#allocation19_spill]] %s4706_s17  ;;  %p4708_p11 = por %p358_p10, %p73_p3 }
  0x1b   : > { %6027 = sst [smem:[#allocation18_spill]] %s6026_s16  ;;  %p4093_p13 = scmp.lt.s32.totalorder %s4567_s26, 2 }
  0x1c   : > { %s6029_s18 = scalar_select %p4708_p11, 1, 0 }
  0x1d   : > { %s4715_s19 = sand.u32 1, %s4555_s23   ;;  %s4718_s20 = sshll.u32 %s4563_s25, 12 }
  0x1e   : > { %6030 = sst [smem:[#allocation20_spill]] %s6029_s18  ;;  %p4722_p0 = pnand %p4093_p13, %p4689_p4 }
  0x1f   : > { %s432_s28 = sand.u32 1, %s4567_s26   ;;  %s3539_s30 = sshll.u32 %s4715_s19, 8 }
  0x20   : > { %s6032_s1 = sld [smem:[#allocation21_spill]]  ;;  %s436_s21 = scalar_lea.vmem [#allocation6], %s3539_s30 }
  0x21   : > { %s446_s23 = sshll.u32 %s436_s21, 4  ;;  %p3545_p1 = scmp.ge.s32.totalorder %s4567_s26, 1  ;;  %s447_s23 = int_to_ptr.vmem [resolvable:$true] %s446_s23 }
  0x22   : > { %p481_p2 = scmp.lt.s32.totalorder %s4567_s26, 3  ;;  %s4734_s25 = scalar_lea.sflag [#allocation7], %s432_s28 }
  0x23   : > { %p4401_p3 = pneg %p4722_p0  ;;  %s4412_s13 = scalar_lea.vmem %s447_s23, 4096 }
  0x24   : > { %p4413_p4 = scmp.ne.s32.totalorder %s447_s23, %s4412_s13  ;;  %s4569_s12 = smov [#allocation6]  }
  0x25   : > { %s4417_s16 = sshll.u32 %s4569_s12, 4  ;;  %s4418_s16 = int_to_ptr.vmem [resolvable:$false] %s4417_s16 }
  0x26   : > { %s445_s18 = scalar_lea.hbm %s6032_s1, %s4718_s20  ;;  %p4415_p5 = pnand %p4413_p4, %p4401_p3 }
  0x27   : > { %s4419_s29 = scalar_lea.vmem %s4418_s16, 8192  ;;  %p4420_p7 = scmp.lt.s32.totalorder %s447_s23, %s4418_s16 }
  0x28   : > { %p4416_p6 = pneg %p4415_p5  ;;  %p4421_p10 = scmp.lt.s32.totalorder %s4419_s29, %s4412_s13 }
  0x2a   : > { %p4422_p13 = por %p4421_p10, %p4420_p7 }
  0x2c   : > { %p4423_p12 = pnand %p4422_p13, %p4416_p6 }
  0x2e   : > { %4426 = shalt.err (!%p4423_p12)
}
  0x2f   : > { %s6011_s21 = smov 128   ;;  %s6013_s17 = smov 8  }
  0x30   : > { %4085 = dma.hbm_to_vmem [thread:$0]  (!%p4722_p0), %s445_s18, 4096, %s447_s23, %s4734_s25, %s6011_s21, %s6011_s21, %s6013_s17  }
  0x31   : > { %p4751_p4 = pnand %p3545_p1, %p481_p2  ;;  %s3536_s16 = sshll.u32 %s4715_s19, 4 }
  0x32   : > { %s421_s13 = scalar_lea.hbm %s5990_s0, %s4718_s20  ;;  %s409_s29 = scalar_lea.vmem [#allocation3], %s3536_s16 }
  0x33   : > { %s422_s1 = sshll.u32 %s409_s29, 4  ;;  %s460_s24 = scalar_lea.vmem [#allocation8], %s3536_s16  ;;  %s423_s1 = int_to_ptr.vmem [resolvable:$true] %s422_s1 }
  0x34   : > { %s473_s11 = sshll.u32 %s460_s24, 4  ;;  %s406_s10 = scalar_lea.sflag [#allocation4], %s4715_s19  ;;  %s4760_s11 = int_to_ptr.vmem [resolvable:$true] %s473_s11 }
  0x35   : > { %s4440_s23 = scalar_lea.vmem %s423_s1, 256  ;;  %s4572_s18 = smov [#allocation3]  }
  0x36   : > { %p4441_p12 = scmp.ne.s32.totalorder %s423_s1, %s4440_s23  ;;  %s4445_s21 = sshll.u32 %s4572_s18, 4  ;;  %s4446_s21 = int_to_ptr.vmem [resolvable:$false] %s4445_s21 }
  0x37   : > { %s4447_s17 = scalar_lea.vmem %s4446_s21, 512  ;;  %p4448_p5 = scmp.lt.s32.totalorder %s423_s1, %s4446_s21 }
  0x38   : > { %p4443_p1 = pnand %p4441_p12, %p4401_p3  ;;  %p4449_p6 = scmp.lt.s32.totalorder %s4447_s17, %s4440_s23 }
  0x3a   : > { %p4444_p2 = pneg %p4443_p1  ;;  %p4450_p7 = por %p4449_p6, %p4448_p5 }
  0x3c   : > { %p4451_p10 = pnand %p4450_p7, %p4444_p2 }
  0x3e   : > { %4454 = shalt.err (!%p4451_p10)
}
  0x3f   : > { %s6034_s24 = smov 8   ;;  %s6035_s16 = smov 128  }
  0x40   : > { %4082 = dma.hbm_to_vmem [thread:$0]  (!%p4722_p0), %s421_s13, 256, %s423_s1, %s406_s10, %s6035_s16, %s6035_s16, %s6034_s24  }
  0x41   : > { %s3746_s19 = sadd.s32 3840, %s4718_s20  ;;  %s4468_s17 = scalar_lea.vmem %s4760_s11, 256 }
  0x42   : > { %s472_s21 = scalar_lea.hbm %s5992_s2, %s3746_s19  ;;  %p4469_p13 = scmp.ne.s32.totalorder %s4760_s11, %s4468_s17 }
  0x43   : > { %s4573_s29 = smov [#allocation8]  }
  0x44   : > { %p4471_p12 = pnand %p4469_p13, %p4401_p3  ;;  %s4473_s23 = sshll.u32 %s4573_s29, 4  ;;  %s4474_s23 = int_to_ptr.vmem [resolvable:$false] %s4473_s23 }
  0x45   : > { %s4475_s18 = scalar_lea.vmem %s4474_s23, 512  ;;  %p4476_p2 = scmp.lt.s32.totalorder %s4760_s11, %s4474_s23 }
  0x46   : > { %p4472_p1 = pneg %p4471_p12  ;;  %p4477_p5 = scmp.lt.s32.totalorder %s4475_s18, %s4468_s17 }
  0x48   : > { %p4478_p6 = por %p4477_p5, %p4476_p2 }
  0x4a   : > { %p4479_p7 = pnand %p4478_p6, %p4472_p1 }
  0x4c   : > { %4482 = shalt.err (!%p4479_p7)
}
  0x4d   : > { %4088 = dma.hbm_to_vmem [thread:$0]  (!%p4722_p0), %s472_s21, 256, %s4760_s11, %s4734_s25, %s6035_s16, %s6035_s16, %s6034_s24  }
  0x4e   : > { %485 = sbr.rel (%p4751_p4) target bundleno = 985 (0x3d9), region = 68  ;;  %s4791_s1 = sand.u32 (!%p4751_p4), 1, %s4551_s22  }
  0x4f   : > { %s3546_s10 = sshll.u32 (!%p4751_p4), %s4791_s1, 4  ;;  %s488_s20 = scalar_lea.sflag (!%p4751_p4), [#allocation4], %s4791_s1 }
  0x50   : > { %s4797_s14 = scalar_lea.vmem (!%p4751_p4), [#allocation3], %s3546_s10 }
  0x53   : > { %4534 = dma.done.wait (%p4697_p8), %s488_s20, 256  }
  0x54   : > { %4536 = vsyncadd (%p4697_p8), %s488_s20, 4294967040  ;;  %s496_s11 = sand.u32 1, %s4677_s27   ;;  %s3547_s25 = sshll.u32 %s4791_s1, 8 }
  0x55   : > { %s497_s12 = scalar_lea.sflag [#allocation7], %s496_s11  ;;  %s4807_s13 = scalar_lea.vmem [#allocation6], %s3547_s25 }
  0x56   : > { %4538 = dma.done.wait (%p4697_p8), %s497_s12, 4352  }
  0x57   : > { %4540 = vsyncadd (%p4697_p8), %s497_s12, 4294962944  ;;  %v4311_v0 = vld [vmem:[%s5993_s3] sm:$0xff]   ;;  %v571_v1 = vld [vmem:[%s4807_s13] sm:$0xff]  ;;  %vm627_vm0 = vcmask 130048   ;;  %v4574_v50 = vmov 0.0   ;;  %vm4575_vm1 = vmmov 0  }
  0x58   : > { %v572_v2 = vld [vmem:[%s4807_s13 + $0x8] sm:$0xff]  ;;  %v573_v3 = vld [vmem:[%s4807_s13 + $0x10] sm:$0xff]  ;;  %3877 = vmatprep.subr.bf16.mxu0 %v4311_v0  ;;  %v574_v5 = vld [vmem:[%s4807_s13 + $0x18] sm:$0xff]  ;;  %4065 = vmatprep.subr.bf16.mxu1 %v4311_v0  ;;  %vm1076_vm2 = vcmask 1046528   ;;  %s4576_s17 = smov 8   ;;  %s4577_s29 = smov 16  }
  0x59   : > { %v603_v4 = vpack.c.bf16 %v572_v2, %v571_v1  ;;  %v575_v6 = vld [vmem:[%s4807_s13 + $0x20] sm:$0xff]  ;;  %v576_v7 = vld [vmem:[%s4807_s13 + $0x28] sm:$0xff]  ;;  %3878 = vmatpush3.bf16.msra.mxu0 %v4311_v0  ;;  %v604_v8 = vpack.c.bf16 %v574_v5, %v573_v3  ;;  %4066 = vmatpush3.bf16.msra.mxu1 %v4311_v0  ;;  %v577_v10 = vld [vmem:[%s4807_s13 + $0x30] sm:$0xff]  ;;  %vm979_vm3 = vcmask 1040384   ;;  %vm1559_vm4 = vcmask 191488   ;;  %s509_s23 = scalar_lea.vmem [#allocation8], %s3546_s10 }
  0x5a   : > { %v605_v9 = vpack.c.bf16 %v576_v7, %v575_v6  ;;  %v578_v11 = vld [vmem:[%s4807_s13 + $0x38] sm:$0xff]  ;;  %v579_v12 = vld [vmem:[%s4807_s13 + $0x40] sm:$0xff]  ;;  %v580_v13 = vld [vmem:[%s4807_s13 + $0x48] sm:$0xff]  ;;  %3911 = vmatprep.subr.bf16.mxu1 %v4574_v50  ;;  %vm2030_vm5 = vcmask 1043456   ;;  %vm1981_vm6 = vcmask 195584   ;;  %vm1365_vm7 = vcmask 64512  }
  0x5b   : > { %3879 = vmatprep.mubr.msk.bf16.mxu0 %vm627_vm0, %v603_v4  ;;  %v591_v14 = vld [vmem:[%s4807_s13 + $0xa0] sm:$0xff]  ;;  %v592_v15 = vld [vmem:[%s4807_s13 + $0xa8] sm:$0xff]  ;;  %v593_v16 = vld [vmem:[%s4807_s13 + $0xb0] sm:$0xff]  ;;  %v606_v22 = vpack.c.bf16 %v578_v11, %v577_v10  ;;  %v607_v24 = vpack.c.bf16 %v580_v13, %v579_v12  ;;  %s6055_s10 = sld [smem:[#allocation22_spill]]  ;;  %s5781_s27 = scalar_lea.vmem [#allocation9], %s3547_s25 }
  0x5c   : > { %3880 = vmatmul.mubr.msk.bf16.vlgmr.msra.gmra.mxu0 %vm627_vm0, %v604_v8  ;;  %v594_v17 = vld [vmem:[%s4807_s13 + $0xb8] sm:$0xff]  ;;  %v613_v18 = vpack.c.bf16 %v592_v15, %v591_v14  ;;  %v595_v20 = vld [vmem:[%s4807_s13 + $0xc0] sm:$0xff]  ;;  %v596_v21 = vld [vmem:[%s4807_s13 + $0xc8] sm:$0xff]  ;;  %s6056_s16 = sld [smem:[#allocation23_spill]]  ;;  %s3396_s28 = sshll.u32 %s5781_s27, 4  ;;  %s5939_s28 = int_to_ptr.vmem [resolvable:$true] %s3396_s28 }
  0x5d   : > { %3883 = vmatprep.mubr.msk.bf16.mxu0 %vm627_vm0, %v605_v9  ;;  %v614_v19 = vpack.c.bf16 %v594_v17, %v593_v16  ;;  %v615_v23 = vpack.c.bf16 %v596_v21, %v595_v20  ;;  %v597_v25 = vld [vmem:[%s4807_s13 + $0xd0] sm:$0xff]  ;;  %v598_v26 = vld [vmem:[%s4807_s13 + $0xd8] sm:$0xff]  ;;  %v599_v27 = vld [vmem:[%s4807_s13 + $0xe0] sm:$0xff]  ;;  %s6057_s25 = sld [smem:[#allocation15_spill]]  ;;  %s3380_s18 = scalar_lea.sflag [#allocation5], %s4791_s1 }
  0x5e   : > { %3899 = vmatprep.mubr.msk.bf16.mxu1 %vm627_vm0, %v613_v18  ;;  %v600_v28 = vld [vmem:[%s4807_s13 + $0xe8] sm:$0xff]  ;;  %v581_v29 = vld [vmem:[%s4807_s13 + $0x50] sm:$0xff]  ;;  %v582_v30 = vld [vmem:[%s4807_s13 + $0x58] sm:$0xff]  ;;  %v616_v33 = vpack.c.bf16 %v598_v26, %v597_v25  ;;  %s4483_s20 = scalar_lea.vmem %s5939_s28, 4096 }
  0x5f   : > { %3900 = vmatmul.mubr.msk.bf16.vlgmr.msra.gmra.mxu1 %vm627_vm0, %v614_v19  ;;  %v583_v31 = vld [vmem:[%s4807_s13 + $0x60] sm:$0xff]  ;;  %v584_v32 = vld [vmem:[%s4807_s13 + $0x68] sm:$0xff]  ;;  %v617_v34 = vpack.c.bf16 %v600_v28, %v599_v27  ;;  %v608_v35 = vpack.c.bf16 %v582_v30, %v581_v29  ;;  %v601_v37 = vld [vmem:[%s4807_s13 + $0xf0] sm:$0xff]  ;;  %p4484_p8 = scmp.ne.s32.totalorder %s5939_s28, %s4483_s20 }
  0x60   : > { %3903 = vmatprep.mubr.msk.bf16.mxu1 %vm627_vm0, %v615_v23  ;;  %v609_v36 = vpack.c.bf16 %v584_v32, %v583_v31  ;;  %v602_v38 = vld [vmem:[%s4807_s13 + $0xf8] sm:$0xff]  ;;  %v585_v39 = vld [vmem:[%s4807_s13 + $0x70] sm:$0xff]  ;;  %v587_v41 = vld [vmem:[%s4807_s13 + $0x80] sm:$0xff] }
  0x61   : > { %v586_v40 = vld [vmem:[%s4807_s13 + $0x78] sm:$0xff]  ;;  %v588_v42 = vld [vmem:[%s4807_s13 + $0x88] sm:$0xff]  ;;  %v618_v43 = vpack.c.bf16 %v602_v38, %v601_v37  ;;  %v589_v46 = vld [vmem:[%s4807_s13 + $0x90] sm:$0xff]  ;;  %p4485_p0 = pnand %p4484_p8, %p4701_p9 }
  0x62   : > { %v610_v44 = vpack.c.bf16 %v586_v40, %v585_v39  ;;  %v611_v45 = vpack.c.bf16 %v588_v42, %v587_v41  ;;  %v590_v47 = vld [vmem:[%s4807_s13 + $0x98] sm:$0xff]  ;;  %v4312_v49 = vld [vmem:[%s5993_s3] sm:$0xff]  }
  0x63   : > { %v612_v48 = vpack.c.bf16 %v590_v47, %v589_v46  ;;  %3912 = vmatpush3.bf16.msra.mxu1 %v4312_v49  ;;  %v4871_v52 = vld [vmem:[%s5994_s4] ss:$0 sm:$0xff]  ;;  %v1593_v60 = vld [vmem:[%s4797_s14 + $0x8] sm:$0xff]  ;;  %s3783_s19 = sshll.u32 %s6057_s25, 12  ;;  %p4486_p3 = pneg %p4485_p0 }
  0x64   : > { %3884 = vmatmul.mubr.msk.bf16.gmra.mxu0 %vm627_vm0, %v606_v22  ;;  %3917 = vmatprep.subr.bf16.mxu1 %v4574_v50  ;;  %v4878_v57 = vld [vmem:[%s5995_s5] ss:$0 sm:$0xff] }
  0x65   : > { %3887 = vmatprep.mubr.msk.bf16.mxu0 %vm627_vm0, %v607_v24  ;;  %v1592_v59 = vld [vmem:[%s4797_s14] sm:$0xff] }
  0x66   : > { %v1594_v0 = vpack.c.bf16 %v1593_v60, %v1592_v59 }
  0x67   : > { %3904 = vmatmul.mubr.msk.bf16.gmra.mxu1 %vm627_vm0, %v616_v33 }
  0x68   : > { %3907 = vmatprep.mubr.msk.bf16.mxu1 %vm627_vm0, %v617_v34 }
  0x6c   : > { %3888 = vmatmul.mubr.msk.bf16.gmra.mxu0 %vm627_vm0, %v608_v35 }
  0x6d   : > { %3891 = vmatprep.mubr.msk.bf16.mxu0 %vm627_vm0, %v609_v36 }
  0x6f   : > { %3908 = vmatmul.mubr.msk.bf16.gmra.mxu1 %vm627_vm0, %v618_v43 }
  0x70   : > { %3913 = vmatprep.mubr.msk.bf16.mxu1 %vm4575_vm1, %v4574_v50 }
  0x74   : > { %3892 = vmatmul.mubr.msk.bf16.gmra.mxu0 %vm627_vm0, %v610_v44 }
  0x75   : > { %3895 = vmatprep.mubr.msk.bf16.mxu0 %vm627_vm0, %v611_v45 }
  0x77   : > { %3914 = vmatmul.mubr.msk.bf16.vlgmr.msra.gmra.mxu1 %vm627_vm0, %v1594_v0 }
  0x78   : > { %3918 = vmatpush3.bf16.msra.mxu1 %v4312_v49  ;;  %3919 = vmatprep.mubr.msk.bf16.mxu1 %vm4575_vm1, %v4574_v50 }
  0x7c   : > { %3896 = vmatmul.mubr.msk.bf16.gmra.mxu0 %vm627_vm0, %v612_v48 }
 0x11c   : > { %v3881_v51 = vpop.f32.mrf.mxu0 }
 0x11d   : > { %v846_v56 = vmul.f32 %v3881_v51, %v4871_v52 }
 0x11e   : > { %v710_v53 = vpop.f32.mrf.mxu0 }
 0x11f   : > { %v844_v54 = vmul.f32 %v4871_v52, %v710_v53  ;;  %v3901_v63 = vpop.f32.mrf.mxu1  ;;  %v885_v4 = vadd.f32 %v4878_v57, %v846_v56 }
 0x120   : > { %v3882_v55 = vpop.f32.mrf.mxu0  ;;  %v866_v28 = vmul.f32 %v3901_v63, %v4871_v52 }
 0x121   : > { %v847_v58 = vmul.f32 %v3882_v55, %v4871_v52  ;;  %v883_v61 = vadd.f32 %v4878_v57, %v844_v54  ;;  %v790_v8 = vpop.f32.mrf.mxu1  ;;  %v4897_v13 = vmax.f32 %v885_v4, 0.0 }
 0x122   : > { %v713_v62 = vpop.f32.mrf.mxu0  ;;  %v905_v43 = vadd.f32 %v4878_v57, %v866_v28  ;;  %v864_v0 = vmul.f32 %v4871_v52, %v790_v8 }
 0x123   : > { %v886_v1 = vadd.f32 %v4878_v57, %v847_v58  ;;  %v845_v2 = vmul.f32 %v4871_v52, %v713_v62  ;;  %v4889_v5 = vmax.f32 %v883_v61, 0.0  ;;  %v4906_v21 = vpop.f32.mrf.mxu1  ;;  %v1080_v29 = vrot.slane %v4897_v13, 1 }
 0x124   : > { %v3885_v3 = vpop.f32.mrf.mxu0  ;;  %v983_v55 = vrot.slane %v4897_v13, 7 }
 0x125   : > { %v884_v6 = vadd.f32 %v4878_v57, %v845_v2  ;;  %v4892_v9 = vmax.f32 %v886_v1, 0.0  ;;  %v850_v14 = vmul.f32 %v3885_v3, %v4871_v52  ;;  %v1077_v19 = vrot.slane %v4889_v5, 1  ;;  %v4922_v36 = vpop.f32.mrf.mxu1 }
 0x126   : > { %v726_v7 = vpop.f32.mrf.mxu0  ;;  %v980_v56 = vrot.slane %v4889_v5, 7 }
 0x127   : > { %v848_v10 = vmul.f32 %v4871_v52, %v726_v7  ;;  %v4895_v11 = vmax.f32 %v884_v6, 0.0  ;;  %v1081_v23 = vrot.slane %v4892_v9, 1  ;;  %v889_v30 = vadd.f32 %v4878_v57, %v850_v14  ;;  %v4943_v54 = vpop.f32.mrf.mxu1 }
 0x128   : > { %v3886_v12 = vpop.f32.mrf.mxu0  ;;  %v4156_v35 = vpack.i.bf16 %v4892_v9, %v4897_v13  ;;  %v984_v1 = vrot.slane %v4892_v9, 7  ;;  %v4963_v14 = vmax.f32 %v905_v43, 0.0  ;;  %v4315_v9 = vld [vmem:[%s5996_s6] sm:$0xff]  }
 0x129   : > { %v851_v15 = vmul.f32 %v3886_v12, %v4871_v52  ;;  %v887_v16 = vadd.f32 %v4878_v57, %v848_v10  ;;  %v4151_v18 = vpack.i.bf16 %v4895_v11, %v4889_v5  ;;  %v1078_v20 = vrot.slane %v4895_v11, 1 }
 0x12a   : > { %v729_v17 = vpop.f32.mrf.mxu0  ;;  %v1082_v39 = vsel %vm1076_vm2, %v1080_v29, %v1081_v23  ;;  %v1142_v40 = vsel %vm1076_vm2, %v1081_v23, 0.0  ;;  %v4934_v44 = vmax.f32 %v889_v30, 0.0  ;;  %v903_v23 = vadd.f32 %v4878_v57, %v864_v0 }
 0x12b   : > { %v890_v22 = vadd.f32 %v4878_v57, %v851_v15  ;;  %v849_v24 = vmul.f32 %v4871_v52, %v729_v17  ;;  %4152 = vrot.lane.b32.xlu0 %v4151_v18, %s4576_s17  ;;  %v1079_v26 = vsel %vm1076_vm2, %v1077_v19, %v1078_v20  ;;  %v1141_v27 = vsel %vm1076_vm2, %v1078_v20, 0.0  ;;  %v4965_v15 = vpop.f32.mrf.mxu1 }
 0x12c   : > { %v3889_v25 = vpop.f32.mrf.mxu0  ;;  %v4917_v31 = vmax.f32 %v887_v16, 0.0  ;;  %v4161_v33 = vpack.i.bf16 %v1141_v27, %v1079_v26  ;;  %v4166_v49 = vpack.i.bf16 %v1142_v40, %v1082_v39  ;;  %v1086_v2 = vrot.slane %v4934_v44, 1 }
 0x12d   : > { %v888_v32 = vadd.f32 %v4878_v57, %v849_v24  ;;  %v4924_v37 = vmax.f32 %v890_v22, 0.0  ;;  %v854_v45 = vmul.f32 %v3889_v25, %v4871_v52  ;;  %v981_v19 = vrot.slane %v4895_v11, 7 }
 0x12e   : > { %v742_v34 = vpop.f32.mrf.mxu0  ;;  %4162 = vrot.lane.b32.xlu1 %v4161_v33, %s4577_s29  ;;  %v1083_v48 = vrot.slane %v4917_v31, 1  ;;  %v867_v24 = vmul.f32 %v4906_v21, %v4871_v52  ;;  %v989_v21 = vrot.slane %v4934_v44, 7  ;;  %v1061_v5 = vsel %vm979_vm3, 0.0, %v983_v55 }
 0x12f   : > { %v852_v38 = vmul.f32 %v4871_v52, %v742_v34  ;;  %v4929_v41 = vmax.f32 %v888_v32, 0.0  ;;  %4157 = vrot.lane.b32.xlu0 %v4156_v35, %s4576_s17  ;;  %v1087_v59 = vrot.slane %v4924_v37, 1  ;;  %v893_v3 = vadd.f32 %v4878_v57, %v854_v45  ;;  %v4989_v35 = vpop.f32.mrf.mxu1 }
 0x130   : > { %v3890_v42 = vpop.f32.mrf.mxu0  ;;  %v4171_v7 = vpack.i.bf16 %v4924_v37, %v4934_v44 }
 0x131   : > { %v891_v46 = vadd.f32 %v4878_v57, %v852_v38  ;;  %v855_v47 = vmul.f32 %v3890_v42, %v4871_v52  ;;  %v4176_v51 = vpack.i.bf16 %v4929_v41, %v4917_v31  ;;  %v1084_v53 = vrot.slane %v4929_v41, 1 }
 0x132   : > { %v745_v50 = vpop.f32.mrf.mxu0  ;;  %4167 = vrot.lane.b32.xlu1 %v4166_v49, %s4577_s29  ;;  %v1088_v17 = vsel %vm1076_vm2, %v1086_v2, %v1087_v59  ;;  %v1144_v18 = vsel %vm1076_vm2, %v1087_v59, 0.0  ;;  %v4980_v25 = vmax.f32 %v893_v3, 0.0  ;;  %v986_v38 = vrot.slane %v4917_v31, 7 }
 0x133   : > { %v894_v58 = vadd.f32 %v4878_v57, %v855_v47  ;;  %v853_v60 = vmul.f32 %v4871_v52, %v745_v50  ;;  %4177 = vrot.lane.b32.xlu0 %v4176_v51, %s4576_s17  ;;  %v1085_v62 = vsel %vm1076_vm2, %v1083_v48, %v1084_v53  ;;  %v1143_v63 = vsel %vm1076_vm2, %v1084_v53, 0.0 }
 0x134   : > { %v3893_v61 = vpop.f32.mrf.mxu0  ;;  %v4958_v4 = vmax.f32 %v891_v46, 0.0  ;;  %v4186_v12 = vpack.i.bf16 %v1143_v63, %v1085_v62  ;;  %v4181_v30 = vpack.i.bf16 %v1144_v18, %v1088_v17  ;;  %v990_v42 = vrot.slane %v4924_v37, 7  ;;  %v809_v62 = vpop.f32.mrf.mxu1 }
 0x135   : > { %v892_v6 = vadd.f32 %v4878_v57, %v853_v60  ;;  %v4967_v8 = vmax.f32 %v894_v58, 0.0  ;;  %v858_v27 = vmul.f32 %v3893_v61, %v4871_v52  ;;  %v1092_v48 = vrot.slane %v4980_v25, 1 }
 0x136   : > { %v758_v10 = vpop.f32.mrf.mxu0  ;;  %4172 = vrot.lane.b32.xlu1 %v4171_v7, %s4576_s17  ;;  %v1089_v26 = vrot.slane %v4958_v4, 1  ;;  %v1110_v51 = vrot.slane %v4963_v14, 1  ;;  %v995_v17 = vrot.slane %v4980_v25, 7  ;;  %v992_v18 = vrot.slane %v4958_v4, 7 }
 0x137   : > { %v856_v16 = vmul.f32 %v4871_v52, %v758_v10  ;;  %v4973_v20 = vmax.f32 %v892_v6, 0.0  ;;  %4187 = vrot.lane.b32.xlu0 %v4186_v12, %s4577_s29  ;;  %v1093_v40 = vrot.slane %v4967_v8, 1  ;;  %v897_v49 = vadd.f32 %v4878_v57, %v858_v27 }
 0x138   : > { %v3894_v22 = vpop.f32.mrf.mxu0  ;;  %v4191_v59 = vpack.i.bf16 %v4967_v8, %v4980_v25  ;;  %v987_v6 = vrot.slane %v4929_v41, 7  ;;  %v5019_v12 = vmax.f32 %v903_v23, 0.0  ;;  %v5201_v41 = vsel %vm979_vm3, %v989_v21, %v990_v42 }
 0x139   : > { %v895_v28 = vadd.f32 %v4878_v57, %v856_v16  ;;  %v859_v29 = vmul.f32 %v3894_v22, %v4871_v52  ;;  %v4196_v33 = vpack.i.bf16 %v4973_v20, %v4958_v4  ;;  %v1090_v34 = vrot.slane %v4973_v20, 1 }
 0x13a   : > { %v761_v32 = vpop.f32.mrf.mxu0  ;;  %4182 = vrot.lane.b32.xlu1 %v4181_v30, %s4577_s29  ;;  %v1094_v2 = vsel %vm1076_vm2, %v1092_v48, %v1093_v40  ;;  %v1146_v3 = vsel %vm1076_vm2, %v1093_v40, 0.0  ;;  %v906_v16 = vadd.f32 %v4878_v57, %v867_v24  ;;  %v865_v40 = vmul.f32 %v4871_v52, %v4922_v36 }
 0x13b   : > { %v857_v43 = vmul.f32 %v4871_v52, %v761_v32  ;;  %4197 = vrot.lane.b32.xlu0 %v4196_v33, %s4576_s17  ;;  %v1091_v46 = vsel %vm1076_vm2, %v1089_v26, %v1090_v34  ;;  %v1145_v47 = vsel %vm1076_vm2, %v1090_v34, 0.0  ;;  %v5003_v50 = vmax.f32 %v895_v28, 0.0  ;;  %v3909_v32 = vpop.f32.mrf.mxu1 }
 0x13c   : > { %v3897_v45 = vpop.f32.mrf.mxu0  ;;  %v898_v53 = vadd.f32 %v4878_v57, %v859_v29  ;;  %v4206_v61 = vpack.i.bf16 %v1145_v47, %v1091_v46  ;;  %v4201_v28 = vpack.i.bf16 %v1146_v3, %v1094_v2  ;;  %v5031_v33 = vmax.f32 %v897_v49, 0.0 }
 0x13d   : > { %v896_v58 = vadd.f32 %v4878_v57, %v857_v43  ;;  %v862_v63 = vmul.f32 %v3897_v45, %v4871_v52  ;;  %v1095_v22 = vrot.slane %v5003_v50, 1  ;;  %v996_v48 = vrot.slane %v4967_v8, 7 }
 0x13e   : > { %v774_v60 = vpop.f32.mrf.mxu0  ;;  %4192 = vrot.lane.b32.xlu1 %v4191_v59, %s4576_s17  ;;  %v5026_v27 = vmax.f32 %v898_v53, 0.0  ;;  %v1107_v53 = vrot.slane %v5019_v12, 1  ;;  %v5047_v59 = vmax.f32 %v906_v16, 0.0  ;;  %v1098_v2 = vrot.slane %v5031_v33, 1 }
 0x13f   : > { %v860_v0 = vmul.f32 %v4871_v52, %v774_v60  ;;  %v5015_v7 = vmax.f32 %v896_v58, 0.0  ;;  %4207 = vrot.lane.b32.xlu0 %v4206_v61, %s4577_s29  ;;  %v901_v24 = vadd.f32 %v4878_v57, %v862_v63  ;;  %v822_v63 = vpop.f32.mrf.mxu1  ;;  %v5188_v11 = vsel %vm979_vm3, %v986_v38, %v987_v6 }
 0x140   : > { %v3898_v10 = vpop.f32.mrf.mxu0  ;;  %v4211_v60 = vpack.i.bf16 %v5026_v27, %v5031_v33  ;;  %v1099_v61 = vrot.slane %v5026_v27, 1  ;;  %v6036_v8 = vrot.slane %v5026_v27, 7 }
 0x141   : > { %v863_v26 = vmul.f32 %v3898_v10, %v4871_v52  ;;  %v4216_v30 = vpack.i.bf16 %v5015_v7, %v5003_v50  ;;  %v1096_v23 = vrot.slane %v5015_v7, 1  ;;  %v899_v34 = vadd.f32 %v4878_v57, %v860_v0 }
 0x142   : > { %v777_v29 = vpop.f32.mrf.mxu0  ;;  %4202 = vrot.lane.b32.xlu1 %v4201_v28, %s4577_s29  ;;  %v993_v0 = vrot.slane %v4973_v20, 7  ;;  %v870_v10 = vmul.f32 %v4943_v54, %v4871_v52  ;;  %v904_v28 = vadd.f32 %v4878_v57, %v865_v40  ;;  %v1148_v54 = vsel %vm1076_vm2, %v1099_v61, 0.0 }
 0x143   : > { %v902_v43 = vadd.f32 %v4878_v57, %v863_v26  ;;  %v861_v45 = vmul.f32 %v4871_v52, %v777_v29  ;;  %4217 = vrot.lane.b32.xlu0 %v4216_v30, %s4576_s17  ;;  %v1097_v46 = vsel %vm1076_vm2, %v1095_v22, %v1096_v23  ;;  %v1147_v47 = vsel %vm1076_vm2, %v1096_v23, 0.0 }
 0x144   : > { %v4226_v58 = vpack.i.bf16 %v1147_v47, %v1097_v46  ;;  %v5054_v3 = vmax.f32 %v899_v34, 0.0  ;;  %v5058_v22 = vmax.f32 %v901_v24, 0.0  ;;  %v868_v30 = vmul.f32 %v4871_v52, %v4965_v15 }
 0x145   : > { %v900_v36 = vadd.f32 %v4878_v57, %v861_v45  ;;  %v5060_v26 = vmax.f32 %v902_v43, 0.0  ;;  %v1100_v23 = vsel %vm1076_vm2, %v1098_v2, %v1099_v61  ;;  %v998_v24 = vrot.slane %v5003_v50, 7  ;;  %v3910_v45 = vpop.f32.mrf.mxu1 }
 0x146   : > { %4212 = vrot.lane.b32.xlu1 %v4211_v60, %s4576_s17  ;;  %v4221_v43 = vpack.i.bf16 %v1148_v54, %v1100_v23  ;;  %v869_v40 = vmul.f32 %v4871_v52, %v809_v62  ;;  %v1101_v46 = vrot.slane %v5054_v3, 1  ;;  %v909_v47 = vadd.f32 %v4878_v57, %v870_v10 }
 0x147   : > { %v5062_v16 = vmax.f32 %v900_v36, 0.0  ;;  %4227 = vrot.lane.b32.xlu0 %v4226_v58, %s4577_s29  ;;  %v1104_v36 = vrot.slane %v5058_v22, 1  ;;  %v5081_v60 = vmax.f32 %v904_v28, 0.0  ;;  %v871_v61 = vmul.f32 %v4989_v35, %v4871_v52  ;;  %v825_v34 = vpop.f32.mrf.mxu1 }
 0x148   : > { %v1105_v62 = vrot.slane %v5060_v26, 1  ;;  %v907_v2 = vadd.f32 %v4878_v57, %v868_v30  ;;  %v874_v54 = vmul.f32 %v3909_v32, %v4871_v52  ;;  %v908_v39 = vadd.f32 %v4878_v57, %v869_v40 }
 0x149   : > { %v4236_v58 = vpack.i.bf16 %v5062_v16, %v5054_v3  ;;  %v1102_v15 = vrot.slane %v5062_v16, 1  ;;  %v999_v49 = vrot.slane %v5015_v7, 7  ;;  %v5097_v30 = vmax.f32 %v909_v47, 0.0  ;;  %v5255_v7 = vld [vmem:[%s5996_s6 + $0x20] ss:$0 sps:$4 sm:$0xff]  }
 0x14a   : > { %4222 = vrot.lane.b32.xlu1 %v4221_v43, %s4577_s29  ;;  %v4231_v43 = vpack.i.bf16 %v5060_v26, %v5058_v22  ;;  %v910_v32 = vadd.f32 %v4878_v57, %v871_v61  ;;  %v872_v40 = vmul.f32 %v4871_v52, %v822_v63  ;;  %v1108_v29 = vrot.slane %v5081_v60, 1 }
 0x14b   : > { %4237 = vrot.lane.b32.xlu0 %v4236_v58, %s4576_s17  ;;  %v1103_v10 = vsel %vm1076_vm2, %v1101_v46, %v1102_v15  ;;  %v1149_v23 = vsel %vm1076_vm2, %v1102_v15, 0.0  ;;  %v1106_v58 = vsel %vm1076_vm2, %v1104_v36, %v1105_v62  ;;  %v1150_v46 = vsel %vm1076_vm2, %v1105_v62, 0.0 }
 0x14c   : > { %v4246_v35 = vpack.i.bf16 %v1149_v23, %v1103_v10  ;;  %v5106_v10 = vmax.f32 %v907_v2, 0.0  ;;  %v913_v47 = vadd.f32 %v4878_v57, %v874_v54  ;;  %v875_v36 = vmul.f32 %v3910_v45, %v4871_v52 }
 0x14d   : > { %v873_v62 = vmul.f32 %v4871_v52, %v825_v34  ;;  %v5113_v61 = vmax.f32 %v908_v39, 0.0  ;;  %v1111_v63 = vrot.slane %v5047_v59, 1  ;;  %v4251_v54 = vpack.i.bf16 %v5081_v60, %v5019_v12 }
 0x14e   : > { %4232 = vrot.lane.b32.xlu1 %v4231_v43, %s4576_s17  ;;  %v4241_v43 = vpack.i.bf16 %v1150_v46, %v1106_v58  ;;  %v5121_v45 = vmax.f32 %v910_v32, 0.0  ;;  %v911_v52 = vadd.f32 %v4878_v57, %v872_v40  ;;  %v1109_v39 = vsel %vm1076_vm2, %v1107_v53, %v1108_v29 }
 0x14f   : > { %4247 = vrot.lane.b32.xlu0 %v4246_v35, %s4577_s29  ;;  %v1151_v34 = vsel %vm1076_vm2, %v1108_v29, 0.0  ;;  %v1113_v58 = vrot.slane %v5106_v10, 1  ;;  %v5130_v46 = vmax.f32 %v913_v47, 0.0  ;;  %v914_v32 = vadd.f32 %v4878_v57, %v875_v36 }
 0x150   : > { %v912_v35 = vadd.f32 %v4878_v57, %v873_v62  ;;  %v4256_v40 = vpack.i.bf16 %v5047_v59, %v4963_v14  ;;  %v1152_v53 = vsel %vm1076_vm2, %v1111_v63, 0.0  ;;  %v1114_v29 = vrot.slane %v5113_v61, 1  ;;  %v1698_v57 = vld [vmem:[%s509_s23] sm:$0xff]  ;;  %v4313_v62 = vld [vmem:[%s5996_s6 + $0x8] ss:$0 sps:$4 sm:$0xff]  }
 0x151   : > { %v1005_v47 = vrot.slane %v5062_v16, 7  ;;  %v1116_v23 = vrot.slane %v5097_v30, 1  ;;  %v4261_v36 = vpack.i.bf16 %v1151_v34, %v1109_v39  ;;  %v5152_v2 = vmax.f32 %v911_v52, 0.0  ;;  %v4314_v39 = vld [vmem:[%s5996_s6 + $0x14] ss:$0 sps:$4 sm:$0xff]   ;;  %4068 = vmatprep.subr.msk.bf16.mxu0 %vm2030_vm5, %v4313_v62 }
 0x152   : > { %4242 = vrot.lane.b32.xlu1 %v4241_v43, %s4577_s29  ;;  %v1112_v43 = vsel %vm1076_vm2, %v1110_v51, %v1111_v63  ;;  %v1017_v63 = vrot.slane %v5113_v61, 7  ;;  %v4271_v16 = vpack.i.bf16 %v5113_v61, %v5106_v10  ;;  %v1025_v34 = vrot.slane %v5130_v46, 7  ;;  %4067 = vmatprep.subr.msk.bf16.mxu1 %vm2030_vm5, %v4314_v39 }
 0x153   : > { %4252 = vrot.lane.b32.xlu0 %v4251_v54, %s4576_s17  ;;  %v1699_v54 = vld [vmem:[%s509_s23 + $0x8] sm:$0xff]  ;;  %v5161_v15 = vmax.f32 %v914_v32, 0.0  ;;  %v5163_v28 = vmax.f32 %v912_v35, 0.0  ;;  %v4266_v52 = vpack.i.bf16 %v1152_v53, %v1112_v43  ;;  %v1115_v51 = vsel %vm1076_vm2, %v1113_v58, %v1114_v29 }
 0x154   : > { %v5173_v61 = vsel %vm979_vm3, %v980_v56, %v981_v19  ;;  %v5180_v35 = vsel %vm979_vm3, %v983_v55, %v984_v1  ;;  %v1153_v32 = vsel %vm1076_vm2, %v1114_v29, 0.0  ;;  %v1700_v58 = vpack.c.bf16 %v1699_v54, %v1698_v57  ;;  %v4316_v43 = vld [vmem:[%s5996_s6 + $0xc] sm:$0xff]  }
 0x155   : > { %v1022_v19 = vrot.slane %v5152_v2, 7  ;;  %v2333_v1 = vsel %vm2030_vm5, %v4313_v62, 0  ;;  %v2032_v6 = vsel %vm2030_vm5, %v4314_v39, 0  ;;  %v1119_v53 = vrot.slane %v5152_v2, 1 }
 0x156   : > { %4257 = vrot.lane.b32.xlu1 %v4256_v40, %s4576_s17  ;;  %v1117_v40 = vrot.slane %v5121_v45, 1  ;;  %v4276_v37 = vpack.i.bf16 %v5121_v45, %v5097_v30  ;;  %3920 = vmatmul.mubr.msk.bf16.vlgmr.msra.gmra.mxu1 %vm627_vm0, %v1700_v58  ;;  %v5218_v42 = vsel %vm979_vm3, %v992_v18, %v993_v0  ;;  %v1026_v29 = vrot.slane %v5161_v15, 7 }
 0x157   : > { %4262 = vrot.lane.b32.xlu0 %v4261_v36, %s4577_s29  ;;  %v1023_v54 = vrot.slane %v5163_v28, 7  ;;  %v4281_v36 = vpack.i.bf16 %v1153_v32, %v1115_v51  ;;  %3960 = vmatpush3.bf16.msra.mxu0 %v2333_v1  ;;  %v4578_v57 = vmov 0   ;;  %v5232_v20 = vsel %vm979_vm3, %v995_v17, %v996_v48 }
 0x158   : > { %1799 = vst.msk [vmem:[#allocation2] sm:$0xf] %vm1559_vm4, %v4578_v57  ;;  %1800 = vst.msk [vmem:[#allocation2 + $0x4] sm:$0xf] %vm1559_vm4, %v4578_v57  ;;  %v1118_v0 = vsel %vm1076_vm2, %v1116_v23, %v1117_v40  ;;  %v1154_v62 = vsel %vm1076_vm2, %v1117_v40, 0.0  ;;  %3924 = vmatpush3.bf16.msra.mxu1 %v2032_v6  ;;  %3961 = vmatprep.subr.bf16.mxu0 %v4315_v9  ;;  %v5241_v51 = vsel %vm979_vm3, %v998_v24, %v999_v49 }
 0x159   : > { %1819 = vst.msk [vmem:[#allocation2 + $0x88] sm:$0xf] %vm1559_vm4, %v4578_v57  ;;  %1820 = vst.msk [vmem:[#allocation2 + $0x8c] sm:$0xf] %vm1559_vm4, %v4578_v57  ;;  %v1120_v23 = vrot.slane %v5163_v28, 1  ;;  %3925 = vmatprep.subr.bf16.mxu1 %v4316_v43  ;;  %v6038_v49 = vrot.slane %v5054_v3, 7 }
 0x15a   : > { %4267 = vrot.lane.b32.xlu1 %v4266_v52, %s4577_s29  ;;  %v6039_v27 = vrot.slane %v5060_v26, 7  ;;  %v6040_v52 = vrot.slane %v5058_v22, 7  ;;  %v6041_v32 = vrot.slane %v5081_v60, 7  ;;  %v6042_v58 = vrot.slane %v5019_v12, 7 }
 0x15b   : > { %4272 = vrot.lane.b32.xlu0 %v4271_v16, %s4576_s17  ;;  %v6037_v16 = vrot.slane %v5031_v33, 7  ;;  %v5260_v39 = vsel %vm979_vm3, %v6038_v49, %v1005_v47  ;;  %v6043_v6 = vrot.slane %v5047_v59, 7  ;;  %v6044_v47 = vrot.slane %v4963_v14, 7  ;;  %3962 = vmatpush3.bf16.msra.mxu0 %v4315_v9 }
 0x15c   : > { %v5267_v40 = vsel %vm979_vm3, %v6040_v52, %v6039_v27  ;;  %v5274_v1 = vsel %vm979_vm3, %v6042_v58, %v6041_v32  ;;  %v4286_v60 = vpack.i.bf16 %v1154_v62, %v1118_v0  ;;  %v5299_v59 = vsel %vm979_vm3, %v1022_v19, %v1023_v54  ;;  %3926 = vmatpush3.bf16.msra.mxu1 %v4316_v43 }
 0x15d   : > { %v5248_v48 = vsel %vm979_vm3, %v6037_v16, %v6036_v8  ;;  %v5282_v26 = vsel %vm979_vm3, %v6044_v47, %v6043_v6  ;;  %v6046_v8 = vrot.slane %v5121_v45, 7  ;;  %v6047_v16 = vrot.slane %v5097_v30, 7  ;;  %4069 = vmatprep.subr.msk.bf16.mxu1 %vm2030_vm5, %v5255_v7 }
 0x15e   : > { %4277 = vrot.lane.b32.xlu1 %v4276_v37, %s4576_s17  ;;  %v6045_v37 = vrot.slane %v5106_v10, 7  ;;  %v1122_v49 = vrot.slane %v5130_v46, 1  ;;  %v1123_v0 = vrot.slane %v5161_v15, 1  ;;  %v5308_v45 = vsel %vm979_vm3, %v1025_v34, %v1026_v29 }
 0x15f   : > { %4282 = vrot.lane.b32.xlu0 %v4281_v36, %s4577_s29  ;;  %v5294_v36 = vsel %vm979_vm3, %v6047_v16, %v6046_v8  ;;  %v1121_v9 = vsel %vm1076_vm2, %v1119_v53, %v1120_v23  ;;  %v1155_v54 = vsel %vm1076_vm2, %v1120_v23, 0.0  ;;  %v4296_v43 = vpack.i.bf16 %v5161_v15, %v5130_v46 }
 0x160   : > { %v5287_v57 = vsel %vm979_vm3, %v6045_v37, %v1017_v63  ;;  %v4291_v63 = vpack.i.bf16 %v5163_v28, %v5152_v2  ;;  %v4317_v28 = vld [vmem:[#allocation2] sm:$0xff]   ;;  %v4301_v62 = vpack.i.bf16 %v1155_v54, %v1121_v9  ;;  %v1124_v29 = vsel %vm1076_vm2, %v1122_v49, %v1123_v0 }
 0x161   : > { %v1156_v27 = vsel %vm1076_vm2, %v1123_v0, 0.0  ;;  %3963 = vmatprep.mubr.msk.bf16.mxu0 %vm1981_vm6, %v4317_v28  ;;  %v1060_v6 = vsel %vm979_vm3, 0.0, %v980_v56 }
 0x162   : > { %4287 = vrot.lane.b32.xlu1 %v4286_v60, %s4577_s29  ;;  %v4306_v53 = vpack.i.bf16 %v1156_v27, %v1124_v29 }
 0x163   : > { %4292 = vrot.lane.b32.xlu0 %v4291_v63, %s4576_s17 }
 0x166   : > { %4297 = vrot.lane.b32.xlu1 %v4296_v43, %s4576_s17 }
 0x167   : > { %4302 = vrot.lane.b32.xlu0 %v4301_v62, %s4577_s29 }
 0x16a   : > { %4307 = vrot.lane.b32.xlu1 %v4306_v53, %s4577_s29  ;;  %s6059_s29 = sld [smem:[#allocation24_spill]] }
 0x170   : > { %s5935_s23 = scalar_lea.hbm %s6059_s29, %s3783_s19 }
 0x19d   : > { %v4153_v23 = vpop.permute.xlu0 %4152 }
 0x19e   : > { %v4155_v52 = vunpack.i.h.bf16 %v4153_v23  ;;  %v4154_v32 = vunpack.i.l.bf16 %v4153_v23 }
 0x1a0   : > { %v4163_v58 = vpop.permute.xlu1 %4162  ;;  %v1366_v60 = vsel %vm1365_vm7, %v1060_v6, %v4154_v32  ;;  %v1367_v8 = vsel %vm1365_vm7, %v5173_v61, %v4155_v52 }
 0x1a1   : > { %v4158_v15 = vpop.permute.xlu0 %4157  ;;  %v4165_v47 = vunpack.i.h.bf16 %v4163_v58  ;;  %v4164_v37 = vunpack.i.l.bf16 %v4163_v58 }
 0x1a2   : > { %v4160_v16 = vunpack.i.h.bf16 %v4158_v15  ;;  %v4159_v49 = vunpack.i.l.bf16 %v4158_v15  ;;  %v1062_v15 = vsel %vm979_vm3, 0.0, %v986_v38 }
 0x1a3   : > { %v1398_v63 = vsel %vm627_vm0, %v1366_v60, %v4164_v37  ;;  %v1399_v0 = vsel %vm627_vm0, %v1367_v8, %v4165_v47 }
 0x1a4   : > { %v3747_v9 = vpack.c.bf16 %v1398_v63, %v1398_v63  ;;  %v3748_v54 = vpack.c.bf16 %v1399_v0, %v1399_v0  ;;  %v4168_v28 = vpop.permute.xlu1 %4167  ;;  %v1369_v61 = vsel %vm1365_vm7, %v5180_v35, %v4160_v16  ;;  %v1368_v29 = vsel %vm1365_vm7, %v1061_v5, %v4159_v49 }
 0x1a5   : > { %v4178_v43 = vpop.permute.xlu0 %4177  ;;  %v4170_v56 = vunpack.i.h.bf16 %v4168_v28  ;;  %v4169_v62 = vunpack.i.l.bf16 %v4168_v28 }
 0x1a6   : > { %1560 = vst.msk [vmem:[#allocation2 + $0x8] sm:$0xf] %vm1559_vm4, %v3747_v9  ;;  %1561 = vst.msk [vmem:[#allocation2 + $0xc] sm:$0xf] %vm1559_vm4, %v3748_v54  ;;  %v4180_v27 = vunpack.i.h.bf16 %v4178_v43  ;;  %v4179_v53 = vunpack.i.l.bf16 %v4178_v43  ;;  %v1063_v9 = vsel %vm979_vm3, 0.0, %v989_v21 }
 0x1a7   : > { %v1401_v23 = vsel %vm627_vm0, %v1369_v61, %v4170_v56  ;;  %v1400_v52 = vsel %vm627_vm0, %v1368_v29, %v4169_v62 }
 0x1a8   : > { %v3750_v13 = vpack.c.bf16 %v1401_v23, %v1401_v23  ;;  %v3749_v32 = vpack.c.bf16 %v1400_v52, %v1400_v52  ;;  %v4173_v55 = vpop.permute.xlu1 %4172  ;;  %v1370_v35 = vsel %vm1365_vm7, %v1062_v15, %v4179_v53  ;;  %v1371_v37 = vsel %vm1365_vm7, %v5188_v11, %v4180_v27  ;;  %v4337_v52 = vld [vmem:[%s5996_s6 + $0x18] sm:$0xff]  }
 0x1a9   : > { %v4188_v58 = vpop.permute.xlu0 %4187  ;;  %v4175_v60 = vunpack.i.h.bf16 %v4173_v55  ;;  %v4174_v8 = vunpack.i.l.bf16 %v4173_v55  ;;  %v1064_v53 = vsel %vm979_vm3, 0.0, %v992_v18 }
 0x1aa   : > { %v4190_v6 = vunpack.i.h.bf16 %v4188_v58  ;;  %v4189_v47 = vunpack.i.l.bf16 %v4188_v58  ;;  %1563 = vst.msk [vmem:[#allocation2 + $0x14] sm:$0xf] %vm1559_vm4, %v3750_v13  ;;  %1562 = vst.msk [vmem:[#allocation2 + $0x10] sm:$0xf] %vm1559_vm4, %v3749_v32  ;;  %v2671_v58 = vsel %vm2030_vm5, %v5255_v7, 0 }
 0x1ab   : > { %v1372_v5 = vsel %vm1365_vm7, %v1063_v9, %v4174_v8  ;;  %v1373_v11 = vsel %vm1365_vm7, %v5201_v41, %v4175_v60 }
 0x1ac   : > { %v1402_v16 = vsel %vm627_vm0, %v1370_v35, %v4189_v47  ;;  %v1403_v49 = vsel %vm627_vm0, %v1371_v37, %v4190_v6  ;;  %v4183_v38 = vpop.permute.xlu1 %4182 }
 0x1ad   : > { %v3751_v31 = vpack.c.bf16 %v1402_v16, %v1402_v16  ;;  %v3752_v63 = vpack.c.bf16 %v1403_v49, %v1403_v49  ;;  %v4198_v0 = vpop.permute.xlu0 %4197  ;;  %v4185_v54 = vunpack.i.h.bf16 %v4183_v38  ;;  %v4184_v28 = vunpack.i.l.bf16 %v4183_v38  ;;  %v4318_v43 = vld [vmem:[#allocation2 + $0x8] sm:$0xff]  }
 0x1ae   : > { %v4200_v56 = vunpack.i.h.bf16 %v4198_v0  ;;  %v4199_v62 = vunpack.i.l.bf16 %v4198_v0  ;;  %v4319_v61 = vld [vmem:[#allocation2 + $0x8] sm:$0xff]   ;;  %3927 = vmatprep.mubr.msk.bf16.mxu1 %vm1981_vm6, %v4318_v43 }
 0x1af   : > { %1564 = vst.msk [vmem:[#allocation2 + $0x18] sm:$0xf] %vm1559_vm4, %v3751_v31  ;;  %1565 = vst.msk [vmem:[#allocation2 + $0x1c] sm:$0xf] %vm1559_vm4, %v3752_v63  ;;  %v1404_v29 = vsel %vm627_vm0, %v1372_v5, %v4184_v28  ;;  %v1405_v44 = vsel %vm627_vm0, %v1373_v11, %v4185_v54  ;;  %3964 = vmatmul.mubr.msk.bf16.vlgmr.msra.gmra.mxu0 %vm1981_vm6, %v4319_v61 }
 0x1b0   : > { %v3753_v21 = vpack.c.bf16 %v1404_v29, %v1404_v29  ;;  %v3754_v27 = vpack.c.bf16 %v1405_v44, %v1405_v44  ;;  %v4193_v41 = vpop.permute.xlu1 %4192  ;;  %v1374_v4 = vsel %vm1365_vm7, %v1064_v53, %v4199_v62  ;;  %v1375_v18 = vsel %vm1365_vm7, %v5218_v42, %v4200_v56 }
 0x1b1   : > { %v4208_v23 = vpop.permute.xlu0 %4207  ;;  %v4321_v55 = vld [vmem:[#allocation2 + $0x10] sm:$0xff]   ;;  %v4195_v15 = vunpack.i.h.bf16 %v4193_v41  ;;  %v4194_v6 = vunpack.i.l.bf16 %v4193_v41  ;;  %v1065_v42 = vsel %vm979_vm3, 0.0, %v995_v17 }
 0x1b2   : > { %v4210_v13 = vunpack.i.h.bf16 %v4208_v23  ;;  %v4209_v32 = vunpack.i.l.bf16 %v4208_v23  ;;  %1566 = vst.msk [vmem:[#allocation2 + $0x20] sm:$0xf] %vm1559_vm4, %v3753_v21  ;;  %1567 = vst.msk [vmem:[#allocation2 + $0x24] sm:$0xf] %vm1559_vm4, %v3754_v27  ;;  %v4322_v47 = vld [vmem:[#allocation2 + $0x10] sm:$0xff]   ;;  %3928 = vmatmul.mubr.msk.bf16.vlgmr.msra.gmra.mxu1 %vm1981_vm6, %v4321_v55 }
 0x1b3   : > { %3967 = vmatprep.mubr.msk.bf16.mxu0 %vm1981_vm6, %v4322_v47  ;;  %3996 = vmatpush3.bf16.msra.mxu1 %v2671_v58  ;;  %v1376_v38 = vsel %vm1365_vm7, %v1065_v42, %v4194_v6  ;;  %v1377_v0 = vsel %vm1365_vm7, %v5232_v20, %v4195_v15  ;;  %v1066_v20 = vsel %vm979_vm3, 0.0, %v998_v24 }
 0x1b4   : > { %v1406_v35 = vsel %vm627_vm0, %v1374_v4, %v4209_v32  ;;  %v1407_v37 = vsel %vm627_vm0, %v1375_v18, %v4210_v13  ;;  %v4203_v8 = vpop.permute.xlu1 %4202  ;;  %3997 = vmatprep.subr.bf16.mxu1 %v4337_v52  ;;  %v6048_v32 = vrot.slane %v5031_v33, 7 }
 0x1b5   : > { %v3755_v60 = vpack.c.bf16 %v1406_v35, %v1406_v35  ;;  %v3756_v7 = vpack.c.bf16 %v1407_v37, %v1407_v37  ;;  %v4218_v16 = vpop.permute.xlu0 %4217  ;;  %v4205_v49 = vunpack.i.h.bf16 %v4203_v8  ;;  %v4204_v31 = vunpack.i.l.bf16 %v4203_v8 }
 0x1b6   : > { %v4323_v63 = vld [vmem:[#allocation2 + $0x18] sm:$0xff]   ;;  %v4220_v9 = vunpack.i.h.bf16 %v4218_v16  ;;  %v4219_v54 = vunpack.i.l.bf16 %v4218_v16  ;;  %v1067_v55 = vsel %vm979_vm3, 0.0, %v6048_v32 }
 0x1b7   : > { %1568 = vst.msk [vmem:[#allocation2 + $0x28] sm:$0xf] %vm1559_vm4, %v3755_v60  ;;  %1569 = vst.msk [vmem:[#allocation2 + $0x2c] sm:$0xf] %vm1559_vm4, %v3756_v7  ;;  %v4324_v28 = vld [vmem:[#allocation2 + $0x18] sm:$0xff]   ;;  %v1408_v25 = vsel %vm627_vm0, %v1376_v38, %v4204_v31  ;;  %v1409_v17 = vsel %vm627_vm0, %v1377_v0, %v4205_v49  ;;  %3931 = vmatprep.mubr.msk.bf16.mxu1 %vm1981_vm6, %v4323_v63  ;;  %3998 = vmatpush3.bf16.msra.mxu1 %v4337_v52 }
 0x1b8   : > { %v3757_v43 = vpack.c.bf16 %v1408_v25, %v1408_v25  ;;  %v3758_v5 = vpack.c.bf16 %v1409_v17, %v1409_v17  ;;  %v4213_v11 = vpop.permute.xlu1 %4212  ;;  %3968 = vmatmul.mubr.msk.bf16.gmra.mxu0 %vm1981_vm6, %v4324_v28  ;;  %v1378_v44 = vsel %vm1365_vm7, %v1066_v20, %v4219_v54  ;;  %v1379_v21 = vsel %vm1365_vm7, %v5241_v51, %v4220_v9 }
 0x1b9   : > { %v4228_v56 = vpop.permute.xlu0 %4227  ;;  %v4325_v29 = vld [vmem:[#allocation2 + $0x20] sm:$0xff]   ;;  %v4215_v27 = vunpack.i.h.bf16 %v4213_v11  ;;  %v4214_v53 = vunpack.i.l.bf16 %v4213_v11 }
 0x1ba   : > { %v4230_v62 = vunpack.i.h.bf16 %v4228_v56  ;;  %v4229_v61 = vunpack.i.l.bf16 %v4228_v56  ;;  %1570 = vst.msk [vmem:[#allocation2 + $0x30] sm:$0xf] %vm1559_vm4, %v3757_v43  ;;  %1571 = vst.msk [vmem:[#allocation2 + $0x34] sm:$0xf] %vm1559_vm4, %v3758_v5  ;;  %v4326_v41 = vld [vmem:[#allocation2 + $0x20] sm:$0xff]   ;;  %3932 = vmatmul.mubr.msk.bf16.gmra.mxu1 %vm1981_vm6, %v4325_v29 }
 0x1bb   : > { %3971 = vmatprep.mubr.msk.bf16.mxu0 %vm1981_vm6, %v4326_v41  ;;  %v1380_v15 = vsel %vm1365_vm7, %v1067_v55, %v4214_v53  ;;  %v1381_v6 = vsel %vm1365_vm7, %v5248_v48, %v4215_v27  ;;  %v6049_v48 = vrot.slane %v5054_v3, 7  ;;  %v6050_v3 = vrot.slane %v5058_v22, 7 }
 0x1bc   : > { %v1410_v23 = vsel %vm627_vm0, %v1378_v44, %v4229_v61  ;;  %v1411_v50 = vsel %vm627_vm0, %v1379_v21, %v4230_v62  ;;  %v4223_v13 = vpop.permute.xlu1 %4222 }
 0x1bd   : > { %v3759_v24 = vpack.c.bf16 %v1410_v23, %v1410_v23  ;;  %v3760_v52 = vpack.c.bf16 %v1411_v50, %v1411_v50  ;;  %v4225_v58 = vunpack.i.h.bf16 %v4223_v13  ;;  %v4224_v51 = vunpack.i.l.bf16 %v4223_v13  ;;  %v4238_v4 = vpop.permute.xlu0 %4237 }
 0x1be   : > { %v4327_v18 = vld [vmem:[#allocation2 + $0x28] sm:$0xff]   ;;  %v4240_v37 = vunpack.i.h.bf16 %v4238_v4  ;;  %v4239_v60 = vunpack.i.l.bf16 %v4238_v4  ;;  %v1068_v42 = vsel %vm979_vm3, 0.0, %v6049_v48  ;;  %v1069_v17 = vsel %vm979_vm3, 0.0, %v6050_v3 }
 0x1bf   : > { %1572 = vst.msk [vmem:[#allocation2 + $0x38] sm:$0xf] %vm1559_vm4, %v3759_v24  ;;  %1573 = vst.msk [vmem:[#allocation2 + $0x3c] sm:$0xf] %vm1559_vm4, %v3760_v52  ;;  %v4328_v47 = vld [vmem:[#allocation2 + $0x28] sm:$0xff]   ;;  %v1412_v35 = vsel %vm627_vm0, %v1380_v15, %v4224_v51  ;;  %v1413_v33 = vsel %vm627_vm0, %v1381_v6, %v4225_v58  ;;  %3935 = vmatprep.mubr.msk.bf16.mxu1 %vm1981_vm6, %v4327_v18 }
 0x1c0   : > { %v3761_v7 = vpack.c.bf16 %v1412_v35, %v1412_v35  ;;  %v3762_v8 = vpack.c.bf16 %v1413_v33, %v1413_v33  ;;  %v4233_v16 = vpop.permute.xlu1 %4232  ;;  %3972 = vmatmul.mubr.msk.bf16.gmra.mxu0 %vm1981_vm6, %v4328_v47  ;;  %v1382_v28 = vsel %vm1365_vm7, %v1068_v42, %v4239_v60  ;;  %v1383_v25 = vsel %vm1365_vm7, %v5260_v39, %v4240_v37 }
 0x1c1   : > { %v4248_v49 = vpop.permute.xlu0 %4247  ;;  %v4329_v31 = vld [vmem:[#allocation2 + $0x30] sm:$0xff]   ;;  %v4235_v63 = vunpack.i.h.bf16 %v4233_v16  ;;  %v4234_v38 = vunpack.i.l.bf16 %v4233_v16 }
 0x1c2   : > { %1574 = vst.msk [vmem:[#allocation2 + $0x40] sm:$0xf] %vm1559_vm4, %v3761_v7  ;;  %1575 = vst.msk [vmem:[#allocation2 + $0x44] sm:$0xf] %vm1559_vm4, %v3762_v8  ;;  %v4250_v0 = vunpack.i.h.bf16 %v4248_v49  ;;  %v4249_v9 = vunpack.i.l.bf16 %v4248_v49  ;;  %v4330_v54 = vld [vmem:[#allocation2 + $0x30] sm:$0xff]   ;;  %3936 = vmatmul.mubr.msk.bf16.gmra.mxu1 %vm1981_vm6, %v4329_v31 }
 0x1c3   : > { %3975 = vmatprep.mubr.msk.bf16.mxu0 %vm1981_vm6, %v4330_v54  ;;  %v1384_v39 = vsel %vm1365_vm7, %v1069_v17, %v4234_v38  ;;  %v1385_v22 = vsel %vm1365_vm7, %v5267_v40, %v4235_v63  ;;  %v6051_v40 = vrot.slane %v5019_v12, 7  ;;  %v6052_v12 = vrot.slane %v4963_v14, 7 }
 0x1c4   : > { %v1414_v43 = vsel %vm627_vm0, %v1382_v28, %v4249_v9  ;;  %v1415_v5 = vsel %vm627_vm0, %v1383_v25, %v4250_v0  ;;  %v4243_v11 = vpop.permute.xlu1 %4242 }
 0x1c5   : > { %v3763_v56 = vpack.c.bf16 %v1414_v43, %v1414_v43  ;;  %v3764_v20 = vpack.c.bf16 %v1415_v5, %v1415_v5  ;;  %v4245_v62 = vunpack.i.h.bf16 %v4243_v11  ;;  %v4244_v61 = vunpack.i.l.bf16 %v4243_v11  ;;  %v4253_v29 = vpop.permute.xlu0 %4252 }
 0x1c6   : > { %v4331_v44 = vld [vmem:[#allocation2 + $0x38] sm:$0xff]   ;;  %v4255_v41 = vunpack.i.h.bf16 %v4253_v29  ;;  %v4254_v23 = vunpack.i.l.bf16 %v4253_v29  ;;  %v1070_v13 = vsel %vm979_vm3, 0.0, %v6051_v40  ;;  %v1071_v35 = vsel %vm979_vm3, 0.0, %v6052_v12 }
 0x1c7   : > { %v4332_v21 = vld [vmem:[#allocation2 + $0x38] sm:$0xff]   ;;  %1576 = vst.msk [vmem:[#allocation2 + $0x48] sm:$0xf] %vm1559_vm4, %v3763_v56  ;;  %1577 = vst.msk [vmem:[#allocation2 + $0x4c] sm:$0xf] %vm1559_vm4, %v3764_v20  ;;  %v1416_v27 = vsel %vm627_vm0, %v1384_v39, %v4244_v61  ;;  %v1417_v53 = vsel %vm627_vm0, %v1385_v22, %v4245_v62  ;;  %3939 = vmatprep.mubr.msk.bf16.mxu1 %vm1981_vm6, %v4331_v44  ;;  %v6054_v29 = vrot.slane %v5097_v30, 7 }
 0x1c8   : > { %v3765_v50 = vpack.c.bf16 %v1416_v27, %v1416_v27  ;;  %v3766_v24 = vpack.c.bf16 %v1417_v53, %v1417_v53  ;;  %v4258_v52 = vpop.permute.xlu1 %4257  ;;  %3976 = vmatmul.mubr.msk.bf16.gmra.mxu0 %vm1981_vm6, %v4332_v21  ;;  %v1387_v6 = vsel %vm1365_vm7, %v5274_v1, %v4255_v41  ;;  %v1386_v47 = vsel %vm1365_vm7, %v1070_v13, %v4254_v23 }
 0x1c9   : > { %v4263_v32 = vpop.permute.xlu0 %4262  ;;  %v4333_v55 = vld [vmem:[#allocation2 + $0x40] sm:$0xff]   ;;  %v4260_v58 = vunpack.i.h.bf16 %v4258_v52  ;;  %v4259_v51 = vunpack.i.l.bf16 %v4258_v52  ;;  %v1073_v44 = vsel %vm979_vm3, 0.0, %v6054_v29 }
 0x1ca   : > { %1578 = vst.msk [vmem:[#allocation2 + $0x50] sm:$0xf] %vm1559_vm4, %v3765_v50  ;;  %1579 = vst.msk [vmem:[#allocation2 + $0x54] sm:$0xf] %vm1559_vm4, %v3766_v24  ;;  %v4265_v4 = vunpack.i.h.bf16 %v4263_v32  ;;  %v4264_v18 = vunpack.i.l.bf16 %v4263_v32  ;;  %v4334_v15 = vld [vmem:[#allocation2 + $0x40] sm:$0xff]   ;;  %3940 = vmatmul.mubr.msk.bf16.gmra.mxu1 %vm1981_vm6, %v4333_v55 }
 0x1cb   : > { %3979 = vmatprep.mubr.msk.bf16.mxu0 %vm1981_vm6, %v4334_v15  ;;  %v1389_v42 = vsel %vm1365_vm7, %v5282_v26, %v4260_v58  ;;  %v1388_v49 = vsel %vm1365_vm7, %v1071_v35, %v4259_v51  ;;  %v6053_v26 = vrot.slane %v5106_v10, 7 }
 0x1cc   : > { %v1418_v33 = vsel %vm627_vm0, %v1386_v47, %v4264_v18  ;;  %v1419_v37 = vsel %vm627_vm0, %v1387_v6, %v4265_v4  ;;  %v4268_v60 = vpop.permute.xlu1 %4267 }
 0x1cd   : > { %v3767_v7 = vpack.c.bf16 %v1418_v33, %v1418_v33  ;;  %v3768_v8 = vpack.c.bf16 %v1419_v37, %v1419_v37  ;;  %v4270_v16 = vunpack.i.h.bf16 %v4268_v60  ;;  %v4269_v48 = vunpack.i.l.bf16 %v4268_v60  ;;  %v4273_v1 = vpop.permute.xlu0 %4272 }
 0x1ce   : > { %v4335_v14 = vld [vmem:[#allocation2 + $0x48] sm:$0xff]   ;;  %v4275_v38 = vunpack.i.h.bf16 %v4273_v1  ;;  %v4274_v0 = vunpack.i.l.bf16 %v4273_v1  ;;  %v1072_v3 = vsel %vm979_vm3, 0.0, %v6053_v26 }
 0x1cf   : > { %1580 = vst.msk [vmem:[#allocation2 + $0x58] sm:$0xf] %vm1559_vm4, %v3767_v7  ;;  %1581 = vst.msk [vmem:[#allocation2 + $0x5c] sm:$0xf] %vm1559_vm4, %v3768_v8  ;;  %v1420_v31 = vsel %vm627_vm0, %v1388_v49, %v4269_v48  ;;  %v1421_v63 = vsel %vm627_vm0, %v1389_v42, %v4270_v16  ;;  %v4336_v9 = vld [vmem:[#allocation2 + $0x48] sm:$0xff]   ;;  %3943 = vmatprep.mubr.msk.bf16.mxu1 %vm1981_vm6, %v4335_v14 }
 0x1d0   : > { %v3769_v54 = vpack.c.bf16 %v1420_v31, %v1420_v31  ;;  %v3770_v28 = vpack.c.bf16 %v1421_v63, %v1421_v63  ;;  %v4278_v25 = vpop.permute.xlu1 %4277  ;;  %3980 = vmatmul.mubr.msk.bf16.gmra.mxu0 %vm1981_vm6, %v4336_v9  ;;  %v1391_v61 = vsel %vm1365_vm7, %v5287_v57, %v4275_v38  ;;  %v1390_v10 = vsel %vm1365_vm7, %v1072_v3, %v4274_v0  ;;  %v1640_v9 = vpop.f32.mrf.mxu1 }
 0x1d1   : > { %v4283_v17 = vpop.permute.xlu0 %4282  ;;  %v4338_v43 = vld [vmem:[#allocation2 + $0x50] sm:$0xff]   ;;  %v4280_v5 = vunpack.i.h.bf16 %v4278_v25  ;;  %v4279_v11 = vunpack.i.l.bf16 %v4278_v25 }
 0x1d2   : > { %1582 = vst.msk [vmem:[#allocation2 + $0x60] sm:$0xf] %vm1559_vm4, %v3769_v54  ;;  %1583 = vst.msk [vmem:[#allocation2 + $0x64] sm:$0xf] %vm1559_vm4, %v3770_v28  ;;  %v4285_v56 = vunpack.i.h.bf16 %v4283_v17  ;;  %v4284_v20 = vunpack.i.l.bf16 %v4283_v17  ;;  %v4339_v62 = vld [vmem:[#allocation2 + $0x50] sm:$0xff]   ;;  %3944 = vmatmul.mubr.msk.bf16.gmra.mxu1 %vm1981_vm6, %v4338_v43  ;;  %v3915_v54 = vpop.f32.mrf.mxu1 }
 0x1d3   : > { %3983 = vmatprep.mubr.msk.bf16.mxu0 %vm1981_vm6, %v4339_v62  ;;  %v1393_v50 = vsel %vm1365_vm7, %v5294_v36, %v4280_v5  ;;  %v1392_v24 = vsel %vm1365_vm7, %v1073_v44, %v4279_v11  ;;  %v1074_v36 = vsel %vm979_vm3, 0.0, %v1022_v19  ;;  %v1075_v19 = vsel %vm979_vm3, 0.0, %v1025_v34  ;;  %v4351_v43 = vld [vmem:[#allocation2 + $0x10] sm:$0xff]   ;;  %v4352_v5 = vld [vmem:[#allocation2 + $0x18] sm:$0xff]   ;;  %v4353_v11 = vld [vmem:[#allocation2 + $0x20] sm:$0xff]  }
 0x1d4   : > { %v1422_v39 = vsel %vm627_vm0, %v1390_v10, %v4284_v20  ;;  %v1423_v22 = vsel %vm627_vm0, %v1391_v61, %v4285_v56  ;;  %v4288_v21 = vpop.permute.xlu1 %4287  ;;  %v1643_v25 = vpop.f32.mrf.mxu1  ;;  %v4354_v56 = vld [vmem:[#allocation2 + $0x28] sm:$0xff]   ;;  %v4355_v20 = vld [vmem:[#allocation2 + $0x30] sm:$0xff]   ;;  %v4356_v62 = vld [vmem:[#allocation2 + $0x38] sm:$0xff]  }
 0x1d5   : > { %v3771_v27 = vpack.c.bf16 %v1422_v39, %v1422_v39  ;;  %v3772_v53 = vpack.c.bf16 %v1423_v22, %v1423_v22  ;;  %v4290_v41 = vunpack.i.h.bf16 %v4288_v21  ;;  %v4289_v23 = vunpack.i.l.bf16 %v4288_v21  ;;  %v4293_v57 = vpop.permute.xlu0 %4292  ;;  %v4357_v61 = vld [vmem:[#allocation2 + $0x40] sm:$0xff]   ;;  %v4358_v44 = vld [vmem:[#allocation2 + $0x48] sm:$0xff]   ;;  %v4359_v39 = vld [vmem:[#allocation2 + $0x50] sm:$0xff]  }
 0x1d6   : > { %v4340_v30 = vld [vmem:[#allocation2 + $0x58] sm:$0xff]   ;;  %v4295_v13 = vunpack.i.h.bf16 %v4293_v57  ;;  %v4294_v32 = vunpack.i.l.bf16 %v4293_v57  ;;  %v3916_v3 = vpop.f32.mrf.mxu1  ;;  %v2992_v10 = vld [vmem:[%s5999_s9] sm:$0xf] }
 0x1d7   : > { %1584 = vst.msk [vmem:[#allocation2 + $0x68] sm:$0xf] %vm1559_vm4, %v3771_v27  ;;  %1585 = vst.msk [vmem:[#allocation2 + $0x6c] sm:$0xf] %vm1559_vm4, %v3772_v53  ;;  %v1424_v52 = vsel %vm627_vm0, %v1392_v24, %v4289_v23  ;;  %v1425_v40 = vsel %vm627_vm0, %v1393_v50, %v4290_v41  ;;  %v4341_v55 = vld [vmem:[#allocation2 + $0x58] sm:$0xff]   ;;  %3947 = vmatprep.mubr.msk.bf16.mxu1 %vm1981_vm6, %v4340_v30  ;;  %4070 = vmatprep.subr.msk.bf16.mxu0 %vm2030_vm5, %v2992_v10  ;;  %v3042_v29 = vsel %vm2030_vm5, %v2992_v10, 0 }
 0x1d8   : > { %v3773_v58 = vpack.c.bf16 %v1424_v52, %v1424_v52  ;;  %v3774_v51 = vpack.c.bf16 %v1425_v40, %v1425_v40  ;;  %v4298_v4 = vpop.permute.xlu1 %4297  ;;  %3984 = vmatmul.mubr.msk.bf16.gmra.mxu0 %vm1981_vm6, %v4341_v55  ;;  %v1395_v37 = vsel %vm1365_vm7, %v5299_v59, %v4295_v13  ;;  %v1394_v2 = vsel %vm1365_vm7, %v1074_v36, %v4294_v32  ;;  %v4360_v22 = vld [vmem:[#allocation2 + $0x58] sm:$0xff]   ;;  %v4366_v52 = vld [vmem:[#allocation2 + $0x88] sm:$0xff]  }
 0x1d9   : > { %v4303_v18 = vpop.permute.xlu0 %4302  ;;  %v4342_v15 = vld [vmem:[#allocation2 + $0x60] sm:$0xff]   ;;  %v4300_v6 = vunpack.i.h.bf16 %v4298_v4  ;;  %v4299_v47 = vunpack.i.l.bf16 %v4298_v4  ;;  %4032 = vmatpush3.bf16.msra.mxu0 %v3042_v29 }
 0x1da   : > { %1586 = vst.msk [vmem:[#allocation2 + $0x70] sm:$0xf] %vm1559_vm4, %v3773_v58  ;;  %1587 = vst.msk [vmem:[#allocation2 + $0x74] sm:$0xf] %vm1559_vm4, %v3774_v51  ;;  %v4305_v12 = vunpack.i.h.bf16 %v4303_v18  ;;  %v4304_v35 = vunpack.i.l.bf16 %v4303_v18  ;;  %v4343_v33 = vld [vmem:[#allocation2 + $0x60] sm:$0xff]   ;;  %3948 = vmatmul.mubr.msk.bf16.gmra.mxu1 %vm1981_vm6, %v4342_v15 }
 0x1db   : > { %3987 = vmatprep.mubr.msk.bf16.mxu0 %vm1981_vm6, %v4343_v33  ;;  %v1397_v59 = vsel %vm1365_vm7, %v5308_v45, %v4300_v6  ;;  %v1396_v49 = vsel %vm1365_vm7, %v1075_v19, %v4299_v47  ;;  %v4361_v21 = vld [vmem:[#allocation2 + $0x60] sm:$0xff]  }
 0x1dc   : > { %v1426_v60 = vsel %vm627_vm0, %v1394_v2, %v4304_v35  ;;  %v1427_v7 = vsel %vm627_vm0, %v1395_v37, %v4305_v12  ;;  %v4308_v8 = vpop.permute.xlu1 %4307 }
 0x1dd   : > { %v3775_v16 = vpack.c.bf16 %v1426_v60, %v1426_v60  ;;  %v3776_v48 = vpack.c.bf16 %v1427_v7, %v1427_v7  ;;  %v4310_v1 = vunpack.i.h.bf16 %v4308_v8  ;;  %v4309_v42 = vunpack.i.l.bf16 %v4308_v8 }
 0x1de   : > { %v4344_v14 = vld [vmem:[#allocation2 + $0x68] sm:$0xff]  }
 0x1df   : > { %1588 = vst.msk [vmem:[#allocation2 + $0x78] sm:$0xf] %vm1559_vm4, %v3775_v16  ;;  %1589 = vst.msk [vmem:[#allocation2 + $0x7c] sm:$0xf] %vm1559_vm4, %v3776_v48  ;;  %v1428_v46 = vsel %vm627_vm0, %v1396_v49, %v4309_v42  ;;  %v1429_v34 = vsel %vm627_vm0, %v1397_v59, %v4310_v1  ;;  %v4345_v31 = vld [vmem:[#allocation2 + $0x68] sm:$0xff]   ;;  %3951 = vmatprep.mubr.msk.bf16.mxu1 %vm1981_vm6, %v4344_v14 }
 0x1e0   : > { %v3777_v63 = vpack.c.bf16 %v1428_v46, %v1428_v46  ;;  %v3778_v38 = vpack.c.bf16 %v1429_v34, %v1429_v34  ;;  %3988 = vmatmul.mubr.msk.bf16.gmra.mxu0 %vm1981_vm6, %v4345_v31  ;;  %v4362_v27 = vld [vmem:[#allocation2 + $0x68] sm:$0xff]  }
 0x1e1   : > { %v4346_v0 = vld [vmem:[#allocation2 + $0x70] sm:$0xff]  }
 0x1e2   : > { %1590 = vst.msk [vmem:[#allocation2 + $0x80] sm:$0xf] %vm1559_vm4, %v3777_v63  ;;  %1591 = vst.msk [vmem:[#allocation2 + $0x84] sm:$0xf] %vm1559_vm4, %v3778_v38  ;;  %v4347_v45 = vld [vmem:[#allocation2 + $0x70] sm:$0xff]   ;;  %3952 = vmatmul.mubr.msk.bf16.gmra.mxu1 %vm1981_vm6, %v4346_v0 }
 0x1e3   : > { %3991 = vmatprep.mubr.msk.bf16.mxu0 %vm1981_vm6, %v4347_v45  ;;  %v4363_v53 = vld [vmem:[#allocation2 + $0x70] sm:$0xff]  }
 0x1e6   : > { %v4348_v28 = vld [vmem:[#allocation2 + $0x78] sm:$0xff]  }
 0x1e7   : > { %v4349_v26 = vld [vmem:[#allocation2 + $0x78] sm:$0xff]   ;;  %3955 = vmatprep.mubr.msk.bf16.mxu1 %vm1981_vm6, %v4348_v28 }
 0x1e8   : > { %3992 = vmatmul.mubr.msk.bf16.gmra.mxu0 %vm1981_vm6, %v4349_v26  ;;  %v4364_v50 = vld [vmem:[#allocation2 + $0x78] sm:$0xff]  }
 0x1e9   : > { %v4350_v17 = vld [vmem:[#allocation2 + $0x80] sm:$0xff]  }
 0x1ea   : > { %3956 = vmatmul.mubr.msk.bf16.gmra.mxu1 %vm1981_vm6, %v4350_v17  ;;  %v4365_v30 = vld [vmem:[#allocation2 + $0x80] sm:$0xff]  }
 0x1eb   : > { %3999 = vmatprep.mubr.msk.bf16.mxu1 %vm1981_vm6, %v4351_v43 }
 0x1f2   : > { %4000 = vmatmul.mubr.msk.bf16.vlgmr.msra.gmra.mxu1 %vm1981_vm6, %v4352_v5 }
 0x1f3   : > { %4003 = vmatprep.mubr.msk.bf16.mxu1 %vm1981_vm6, %v4353_v11 }
 0x1fa   : > { %4004 = vmatmul.mubr.msk.bf16.gmra.mxu1 %vm1981_vm6, %v4354_v56 }
 0x1fb   : > { %4007 = vmatprep.mubr.msk.bf16.mxu1 %vm1981_vm6, %v4355_v20 }
 0x202   : > { %4008 = vmatmul.mubr.msk.bf16.gmra.mxu1 %vm1981_vm6, %v4356_v62 }
 0x203   : > { %4011 = vmatprep.mubr.msk.bf16.mxu1 %vm1981_vm6, %v4357_v61 }
 0x20a   : > { %4012 = vmatmul.mubr.msk.bf16.gmra.mxu1 %vm1981_vm6, %v4358_v44  ;;  %v5616_v44 = vld [vmem:[%s5997_s7] ss:$0 sm:$0xff] }
 0x20b   : > { %4015 = vmatprep.mubr.msk.bf16.mxu1 %vm1981_vm6, %v4359_v39 }
 0x212   : > { %4016 = vmatmul.mubr.msk.bf16.gmra.mxu1 %vm1981_vm6, %v4360_v22 }
 0x213   : > { %4019 = vmatprep.mubr.msk.bf16.mxu1 %vm1981_vm6, %v4361_v21 }
 0x216   : > { %v1738_v41 = vpop.f32.mrf.mxu1 }
 0x218   : > { %v3921_v23 = vpop.f32.mrf.mxu1 }
 0x21a   : > { %4020 = vmatmul.mubr.msk.bf16.gmra.mxu1 %vm1981_vm6, %v4362_v27  ;;  %v1741_v57 = vpop.f32.mrf.mxu1 }
 0x21b   : > { %4023 = vmatprep.mubr.msk.bf16.mxu1 %vm1981_vm6, %v4363_v53  ;;  %v5624_v57 = vld [vmem:[%s5998_s8] ss:$0 sm:$0xff] }
 0x21c   : > { %v3922_v24 = vpop.f32.mrf.mxu1 }
 0x222   : > { %4024 = vmatmul.mubr.msk.bf16.gmra.mxu1 %vm1981_vm6, %v4364_v50 }
 0x223   : > { %4027 = vmatprep.mubr.msk.bf16.mxu1 %vm1981_vm6, %v4365_v30 }
 0x22a   : > { %4028 = vmatmul.mubr.msk.bf16.gmra.mxu1 %vm1981_vm6, %v4366_v52 }
 0x26f   : > { %v3965_v40 = vpop.f32.mrf.mxu0 }
 0x271   : > { %v2369_v55 = vpop.f32.mrf.mxu0 }
 0x272   : > { %v3929_v13 = vpop.f32.mrf.mxu1 }
 0x273   : > { %v3966_v4 = vpop.f32.mrf.mxu0  ;;  %v2378_v61 = vadd.f32 %v3965_v40, %v3929_v13 }
 0x274   : > { %v2068_v32 = vpop.f32.mrf.mxu1 }
 0x275   : > { %v2372_v15 = vpop.f32.mrf.mxu0  ;;  %v2370_v39 = vadd.f32 %v2369_v55, %v2068_v32 }
 0x276   : > { %v3930_v58 = vpop.f32.mrf.mxu1 }
 0x277   : > { %v2381_v27 = vadd.f32 %v3966_v4, %v3930_v58 }
 0x278   : > { %v2071_v51 = vpop.f32.mrf.mxu1  ;;  %v3969_v12 = vpop.f32.mrf.mxu0 }
 0x279   : > { %v2373_v24 = vadd.f32 %v2372_v15, %v2071_v51 }
 0x27a   : > { %v3933_v36 = vpop.f32.mrf.mxu1  ;;  %v2385_v37 = vpop.f32.mrf.mxu0 }
 0x27b   : > { %v2394_v13 = vadd.f32 %v3969_v12, %v3933_v36 }
 0x27c   : > { %v2084_v18 = vpop.f32.mrf.mxu1  ;;  %v5553_v60 = vpop.f32.mrf.mxu0 }
 0x27e   : > { %v5541_v6 = vpop.f32.mrf.mxu1  ;;  %v2388_v16 = vpop.f32.mrf.mxu0 }
 0x280   : > { %v5543_v47 = vpop.f32.mrf.mxu1  ;;  %v5563_v42 = vpop.f32.mrf.mxu0 }
 0x282   : > { %v5545_v35 = vpop.f32.mrf.mxu1  ;;  %v5569_v14 = vpop.f32.mrf.mxu0 }
 0x284   : > { %v5547_v33 = vpop.f32.mrf.mxu1  ;;  %v5575_v31 = vpop.f32.mrf.mxu0 }
 0x286   : > { %v5549_v2 = vpop.f32.mrf.mxu1  ;;  %v5581_v0 = vpop.f32.mrf.mxu0 }
 0x288   : > { %v5551_v19 = vpop.f32.mrf.mxu1  ;;  %v5587_v54 = vpop.f32.mrf.mxu0 }
 0x28a   : > { %v5555_v7 = vpop.f32.mrf.mxu1  ;;  %v5593_v26 = vpop.f32.mrf.mxu0 }
 0x28c   : > { %v5557_v8 = vpop.f32.mrf.mxu1  ;;  %v5599_v43 = vpop.f32.mrf.mxu0 }
 0x28e   : > { %v5559_v48 = vpop.f32.mrf.mxu1  ;;  %v5605_v56 = vpop.f32.mrf.mxu0 }
 0x290   : > { %v5561_v1 = vpop.f32.mrf.mxu1  ;;  %v5611_v10 = vpop.f32.mrf.mxu0 }
 0x292   : > { %v5565_v59 = vpop.f32.mrf.mxu1  ;;  %v5618_v53 = vpop.f32.mrf.mxu0 }
 0x294   : > { %v5567_v49 = vpop.f32.mrf.mxu1  ;;  %v5627_v32 = vpop.f32.mrf.mxu0 }
 0x296   : > { %v5571_v46 = vpop.f32.mrf.mxu1 }
 0x298   : > { %v5573_v34 = vpop.f32.mrf.mxu1 }
 0x29a   : > { %v5577_v63 = vpop.f32.mrf.mxu1 }
 0x29c   : > { %v5579_v38 = vpop.f32.mrf.mxu1 }
 0x29e   : > { %v5583_v45 = vpop.f32.mrf.mxu1 }
 0x2a0   : > { %v5585_v9 = vpop.f32.mrf.mxu1 }
 0x2a2   : > { %v5589_v28 = vpop.f32.mrf.mxu1 }
 0x2a4   : > { %v5591_v25 = vpop.f32.mrf.mxu1 }
 0x2a6   : > { %v5595_v3 = vpop.f32.mrf.mxu1 }
 0x2a8   : > { %v5597_v17 = vpop.f32.mrf.mxu1 }
 0x2aa   : > { %v5601_v5 = vpop.f32.mrf.mxu1 }
 0x2ac   : > { %v5603_v11 = vpop.f32.mrf.mxu1 }
 0x2ae   : > { %v5607_v20 = vpop.f32.mrf.mxu1 }
 0x2b0   : > { %v5609_v62 = vpop.f32.mrf.mxu1 }
 0x2b2   : > { %v4001_v29 = vpop.f32.mrf.mxu1 }
 0x2b3   : > { %v2836_v22 = vadd.f32 %v4001_v29, %v2378_v61  ;;  %v2386_v61 = vadd.f32 %v2385_v37, %v2084_v18  ;;  %v2389_v18 = vadd.f32 %v2388_v16, %v5543_v47  ;;  %v2402_v16 = vadd.f32 %v5569_v14, %v5547_v33 }
 0x2b4   : > { %v2707_v21 = vpop.f32.mrf.mxu1 }
 0x2b5   : > { %v2875_v41 = vmul.f32 %v5616_v44, %v2836_v22  ;;  %v2834_v23 = vadd.f32 %v2707_v21, %v2370_v39 }
 0x2b6   : > { %v4002_v50 = vpop.f32.mrf.mxu1 }
 0x2b7   : > { %v2873_v30 = vmul.f32 %v5616_v44, %v2834_v23  ;;  %v2837_v52 = vadd.f32 %v4002_v50, %v2381_v27  ;;  %v2914_v55 = vadd.f32 %v5624_v57, %v2875_v41  ;;  %v5634_v27 = vpop.f32.mrf.mxu0  ;;  %v2397_v50 = vadd.f32 %v5553_v60, %v5541_v6 }
 0x2b8   : > { %v2710_v40 = vpop.f32.mrf.mxu1 }
 0x2b9   : > { %v2876_v58 = vmul.f32 %v5616_v44, %v2837_v52  ;;  %v2835_v4 = vadd.f32 %v2710_v40, %v2373_v24  ;;  %v2912_v39 = vadd.f32 %v5624_v57, %v2873_v30  ;;  %v2946_v36 = vmax.f32 %v2914_v55, 0.0 }
 0x2ba   : > { %v4005_v29 = vpop.f32.mrf.mxu1  ;;  %v2410_v55 = vadd.f32 %v5563_v42, %v5545_v35 }
 0x2bb   : > { %v2915_v22 = vadd.f32 %v5624_v57, %v2876_v58  ;;  %v2874_v51 = vmul.f32 %v5616_v44, %v2835_v4  ;;  %v2840_v15 = vadd.f32 %v4005_v29, %v2394_v13  ;;  %v2944_v30 = vmax.f32 %v2912_v39, 0.0  ;;  %v5644_v29 = vpop.f32.mrf.mxu0 }
 0x2bc   : > { %v2723_v21 = vpop.f32.mrf.mxu1 }
 0x2bd   : > { %v2947_v12 = vmax.f32 %v2915_v22, 0.0  ;;  %v2913_v23 = vadd.f32 %v5624_v57, %v2874_v51  ;;  %v2838_v41 = vadd.f32 %v2723_v21, %v2386_v61  ;;  %v2879_v37 = vmul.f32 %v5616_v44, %v2840_v15 }
 0x2be   : > { %v4006_v24 = vpop.f32.mrf.mxu1  ;;  %v2413_v21 = vadd.f32 %v5575_v31, %v5549_v2  ;;  %v2426_v31 = vadd.f32 %v5587_v54, %v5555_v7  ;;  %v2429_v7 = vadd.f32 %v5599_v43, %v5559_v48  ;;  %v2421_v48 = vadd.f32 %v5605_v56, %v5561_v1 }
 0x2bf   : > { %v2977_v52 = vpack.c.bf16 %v2947_v12, %v2946_v36  ;;  %v2945_v40 = vmax.f32 %v2913_v23, 0.0  ;;  %v2877_v13 = vmul.f32 %v5616_v44, %v2838_v41  ;;  %v2841_v58 = vadd.f32 %v4006_v24, %v2397_v50  ;;  %v5657_v36 = vpop.f32.mrf.mxu0 }
 0x2c0   : > { %v2726_v4 = vpop.f32.mrf.mxu1  ;;  %v2918_v6 = vadd.f32 %v5624_v57, %v2879_v37 }
 0x2c1   : > { %v2976_v61 = vpack.c.bf16 %v2945_v40, %v2944_v30  ;;  %v2839_v22 = vadd.f32 %v2726_v4, %v2389_v18  ;;  %v2880_v47 = vmul.f32 %v5616_v44, %v2841_v58  ;;  %v2916_v39 = vadd.f32 %v5624_v57, %v2877_v13  ;;  %v5666_v13 = vpop.f32.mrf.mxu0 }
 0x2c2   : > { %v4009_v60 = vpop.f32.mrf.mxu1  ;;  %v2950_v23 = vmax.f32 %v2918_v6, 0.0  ;;  %v2405_v30 = vadd.f32 %v5581_v0, %v5551_v19  ;;  %v2418_v6 = vadd.f32 %v5593_v26, %v5557_v8 }
 0x2c3   : > { %v2878_v51 = vmul.f32 %v5616_v44, %v2839_v22  ;;  %v2844_v15 = vadd.f32 %v4009_v60, %v2410_v55  ;;  %4033 = vmatprep.mubr.msk.bf16.mxu0 %vm1365_vm7, %v2976_v61  ;;  %v2919_v35 = vadd.f32 %v5624_v57, %v2880_v47  ;;  %v2948_v18 = vmax.f32 %v2916_v39, 0.0 }
 0x2c4   : > { %v2739_v42 = vpop.f32.mrf.mxu1  ;;  %4034 = vmatmul.mubr.msk.bf16.vlgmr.msra.gmra.mxu0 %vm1365_vm7, %v2977_v52 }
 0x2c5   : > { %v2917_v12 = vadd.f32 %v5624_v57, %v2878_v51  ;;  %v2883_v33 = vmul.f32 %v5616_v44, %v2844_v15  ;;  %v2842_v14 = vadd.f32 %v2739_v42, %v2402_v16  ;;  %v2951_v41 = vmax.f32 %v2919_v35, 0.0  ;;  %v5679_v16 = vpop.f32.mrf.mxu0 }
 0x2c6   : > { %v4010_v50 = vpop.f32.mrf.mxu1 }
 0x2c7   : > { %v2949_v37 = vmax.f32 %v2917_v12, 0.0  ;;  %v2845_v24 = vadd.f32 %v4010_v50, %v2413_v21  ;;  %v2979_v52 = vpack.c.bf16 %v2951_v41, %v2950_v23  ;;  %v2881_v40 = vmul.f32 %v5616_v44, %v2842_v14  ;;  %v3989_v41 = vpop.f32.mrf.mxu0 }
 0x2c8   : > { %v2742_v2 = vpop.f32.mrf.mxu1  ;;  %v2922_v4 = vadd.f32 %v5624_v57, %v2883_v33  ;;  %v2442_v23 = vadd.f32 %v5611_v10, %v5565_v59 }
 0x2c9   : > { %v2978_v58 = vpack.c.bf16 %v2949_v37, %v2948_v18  ;;  %v2884_v55 = vmul.f32 %v5616_v44, %v2845_v24  ;;  %v2843_v61 = vadd.f32 %v2742_v2, %v2405_v30  ;;  %v2920_v54 = vadd.f32 %v5624_v57, %v2881_v40  ;;  %v2465_v10 = vpop.f32.mrf.mxu0 }
 0x2ca   : > { %v4013_v22 = vpop.f32.mrf.mxu1  ;;  %v2954_v39 = vmax.f32 %v2922_v4, 0.0  ;;  %v2434_v24 = vadd.f32 %v5618_v53, %v5567_v49  ;;  %v2445_v49 = vadd.f32 %v5627_v32, %v5571_v46  ;;  %v2437_v53 = vadd.f32 %v5634_v27, %v5573_v34 }
 0x2cb   : > { %v2923_v19 = vadd.f32 %v5624_v57, %v2884_v55  ;;  %v2848_v0 = vadd.f32 %v4013_v22, %v2426_v31  ;;  %4037 = vmatprep.mubr.msk.bf16.mxu0 %vm1365_vm7, %v2978_v58  ;;  %v2882_v47 = vmul.f32 %v5616_v44, %v2843_v61  ;;  %v2952_v12 = vmax.f32 %v2920_v54, 0.0 }
 0x2cc   : > { %v2755_v60 = vpop.f32.mrf.mxu1  ;;  %4038 = vmatmul.mubr.msk.bf16.gmra.mxu0 %vm1365_vm7, %v2979_v52  ;;  %v2450_v27 = vadd.f32 %v5657_v36, %v5579_v38 }
 0x2cd   : > { %v2955_v51 = vmax.f32 %v2923_v19, 0.0  ;;  %v2887_v8 = vmul.f32 %v5616_v44, %v2848_v0  ;;  %v2846_v26 = vadd.f32 %v2755_v60, %v2418_v6  ;;  %v2921_v15 = vadd.f32 %v5624_v57, %v2882_v47 }
 0x2ce   : > { %v4014_v35 = vpop.f32.mrf.mxu1  ;;  %v2458_v60 = vadd.f32 %v5644_v29, %v5577_v63 }
 0x2cf   : > { %v2981_v43 = vpack.c.bf16 %v2955_v51, %v2954_v39  ;;  %v2885_v42 = vmul.f32 %v5616_v44, %v2846_v26  ;;  %v2849_v21 = vadd.f32 %v4014_v35, %v2429_v7  ;;  %v2953_v33 = vmax.f32 %v2921_v15, 0.0  ;;  %v3990_v39 = vpop.f32.mrf.mxu0 }
 0x2d0   : > { %v2758_v14 = vpop.f32.mrf.mxu1  ;;  %v2926_v50 = vadd.f32 %v5624_v57, %v2887_v8 }
 0x2d1   : > { %v2888_v18 = vmul.f32 %v5616_v44, %v2849_v21  ;;  %v2847_v37 = vadd.f32 %v2758_v14, %v2421_v48  ;;  %v2980_v1 = vpack.c.bf16 %v2953_v33, %v2952_v12  ;;  %v2924_v30 = vadd.f32 %v5624_v57, %v2885_v42 }
 0x2d2   : > { %v4017_v56 = vpop.f32.mrf.mxu1  ;;  %v2958_v31 = vmax.f32 %v2926_v50, 0.0  ;;  %v2461_v48 = vadd.f32 %v5666_v13, %v5583_v45 }
 0x2d3   : > { %v2927_v52 = vadd.f32 %v5624_v57, %v2888_v18  ;;  %v2886_v40 = vmul.f32 %v5616_v44, %v2847_v37  ;;  %v2852_v2 = vadd.f32 %v4017_v56, %v2442_v23  ;;  %4041 = vmatprep.mubr.msk.bf16.mxu0 %vm1365_vm7, %v2980_v1  ;;  %v2956_v6 = vmax.f32 %v2924_v30, 0.0 }
 0x2d4   : > { %v2771_v59 = vpop.f32.mrf.mxu1  ;;  %4042 = vmatmul.mubr.msk.bf16.gmra.mxu0 %vm1365_vm7, %v2981_v43  ;;  %v2468_v43 = vpop.f32.mrf.mxu0  ;;  %v2453_v18 = vadd.f32 %v5679_v16, %v5585_v9  ;;  %v2477_v9 = vadd.f32 %v3990_v39, %v5595_v3 }
 0x2d5   : > { %v2959_v58 = vmax.f32 %v2927_v52, 0.0  ;;  %v2925_v4 = vadd.f32 %v5624_v57, %v2886_v40  ;;  %v2850_v55 = vadd.f32 %v2771_v59, %v2434_v24  ;;  %v2891_v61 = vmul.f32 %v5616_v44, %v2852_v2 }
 0x2d6   : > { %v4018_v22 = vpop.f32.mrf.mxu1  ;;  %v2474_v24 = vadd.f32 %v3989_v41, %v5589_v28  ;;  %v3993_v1 = vpop.f32.mrf.mxu0  ;;  %v2466_v59 = vadd.f32 %v2465_v10, %v5591_v25 }
 0x2d7   : > { %v2983_v19 = vpack.c.bf16 %v2959_v58, %v2958_v31  ;;  %v2957_v0 = vmax.f32 %v2925_v4, 0.0  ;;  %v2889_v7 = vmul.f32 %v5616_v44, %v2850_v55  ;;  %v2853_v54 = vadd.f32 %v4018_v22, %v2445_v49 }
 0x2d8   : > { %v2774_v47 = vpop.f32.mrf.mxu1  ;;  %v2930_v46 = vadd.f32 %v5624_v57, %v2891_v61  ;;  %v2481_v4 = vpop.f32.mrf.mxu0  ;;  %v2469_v22 = vadd.f32 %v2468_v43, %v5597_v17 }
 0x2d9   : > { %v2982_v51 = vpack.c.bf16 %v2957_v0, %v2956_v6  ;;  %v2851_v8 = vadd.f32 %v2774_v47, %v2437_v53  ;;  %v2892_v34 = vmul.f32 %v5616_v44, %v2853_v54  ;;  %v2928_v26 = vadd.f32 %v5624_v57, %v2889_v7 }
 0x2da   : > { %v4021_v32 = vpop.f32.mrf.mxu1  ;;  %v2962_v38 = vmax.f32 %v2930_v46, 0.0  ;;  %v2490_v47 = vadd.f32 %v3993_v1, %v5601_v5  ;;  %v2482_v46 = vadd.f32 %v2481_v4, %v5603_v11  ;;  %v4367_v4 = vld [vmem:[%s4807_s13 + $0x10] sm:$0xff] }
 0x2db   : > { %v2890_v15 = vmul.f32 %v5616_v44, %v2851_v8  ;;  %v2856_v35 = vadd.f32 %v4021_v32, %v2458_v60  ;;  %4045 = vmatprep.mubr.msk.bf16.mxu0 %vm1365_vm7, %v2982_v51  ;;  %v2931_v63 = vadd.f32 %v5624_v57, %v2892_v34  ;;  %v2960_v14 = vmax.f32 %v2928_v26, 0.0  ;;  %v3994_v60 = vpop.f32.mrf.mxu0 }
 0x2dc   : > { %v2787_v29 = vpop.f32.mrf.mxu1  ;;  %4046 = vmatmul.mubr.msk.bf16.gmra.mxu0 %vm1365_vm7, %v2983_v19  ;;  %v2493_v11 = vadd.f32 %v3994_v60, %v5607_v20 }
 0x2dd   : > { %v2929_v42 = vadd.f32 %v5624_v57, %v2890_v15  ;;  %v2895_v21 = vmul.f32 %v5616_v44, %v2856_v35  ;;  %v2854_v12 = vadd.f32 %v2787_v29, %v2450_v27  ;;  %v2963_v36 = vmax.f32 %v2931_v63, 0.0  ;;  %v2484_v35 = vpop.f32.mrf.mxu0 }
 0x2de   : > { %v4022_v33 = vpop.f32.mrf.mxu1 }
 0x2df   : > { %v2961_v23 = vmax.f32 %v2929_v42, 0.0  ;;  %v2857_v50 = vadd.f32 %v4022_v33, %v2461_v48  ;;  %v2985_v37 = vpack.c.bf16 %v2963_v36, %v2962_v38  ;;  %v2893_v45 = vmul.f32 %v5616_v44, %v2854_v12 }
 0x2e0   : > { %v2790_v13 = vpop.f32.mrf.mxu1  ;;  %v2934_v30 = vadd.f32 %v5624_v57, %v2895_v21  ;;  %v2485_v42 = vadd.f32 %v2484_v35, %v5609_v62 }
 0x2e1   : > { %v2984_v56 = vpack.c.bf16 %v2961_v23, %v2960_v14  ;;  %v2896_v52 = vmul.f32 %v5616_v44, %v2857_v50  ;;  %v2855_v40 = vadd.f32 %v2790_v13, %v2453_v18  ;;  %v2932_v16 = vadd.f32 %v5624_v57, %v2893_v45 }
 0x2e2   : > { %v4025_v2 = vpop.f32.mrf.mxu1  ;;  %v2966_v55 = vmax.f32 %v2934_v30, 0.0 }
 0x2e3   : > { %v2935_v31 = vadd.f32 %v5624_v57, %v2896_v52  ;;  %v2860_v58 = vadd.f32 %v4025_v2, %v2474_v24  ;;  %4049 = vmatprep.mubr.msk.bf16.mxu0 %vm1365_vm7, %v2984_v56  ;;  %v2894_v28 = vmul.f32 %v5616_v44, %v2855_v40  ;;  %v2964_v0 = vmax.f32 %v2932_v16, 0.0 }
 0x2e4   : > { %v2803_v41 = vpop.f32.mrf.mxu1  ;;  %4050 = vmatmul.mubr.msk.bf16.gmra.mxu0 %vm1365_vm7, %v2985_v37 }
 0x2e5   : > { %v2967_v49 = vmax.f32 %v2935_v31, 0.0  ;;  %v2899_v53 = vmul.f32 %v5616_v44, %v2860_v58  ;;  %v2858_v61 = vadd.f32 %v2803_v41, %v2466_v59  ;;  %v2933_v25 = vadd.f32 %v5624_v57, %v2894_v28  ;;  %v5768_v31 = vld [vmem:[%s6056_s16] ss:$0 sm:$0xff] }
 0x2e6   : > { %v4026_v10 = vpop.f32.mrf.mxu1 }
 0x2e7   : > { %v2987_v6 = vpack.c.bf16 %v2967_v49, %v2966_v55  ;;  %v2897_v3 = vmul.f32 %v5616_v44, %v2858_v61  ;;  %v2861_v19 = vadd.f32 %v4026_v10, %v2477_v9  ;;  %v2965_v7 = vmax.f32 %v2933_v25, 0.0  ;;  %v4368_v10 = vld [vmem:[%s4807_s13] sm:$0xff] }
 0x2e8   : > { %v2806_v54 = vpop.f32.mrf.mxu1  ;;  %v2938_v39 = vadd.f32 %v5624_v57, %v2899_v53 }
 0x2e9   : > { %v2900_v51 = vmul.f32 %v5616_v44, %v2861_v19  ;;  %v2859_v8 = vadd.f32 %v2806_v54, %v2469_v22  ;;  %v2986_v34 = vpack.c.bf16 %v2965_v7, %v2964_v0  ;;  %v2936_v17 = vadd.f32 %v5624_v57, %v2897_v3  ;;  %v4369_v7 = vld [vmem:[%s4807_s13 + $0x18] sm:$0xff] }
 0x2ea   : > { %v4029_v32 = vpop.f32.mrf.mxu1  ;;  %v2970_v63 = vmax.f32 %v2938_v39, 0.0 }
 0x2eb   : > { %v2939_v27 = vadd.f32 %v5624_v57, %v2900_v51  ;;  %v2898_v26 = vmul.f32 %v5616_v44, %v2859_v8  ;;  %v2864_v15 = vadd.f32 %v4029_v32, %v2490_v47  ;;  %4053 = vmatprep.mubr.msk.bf16.mxu0 %vm1365_vm7, %v2986_v34  ;;  %v2968_v38 = vmax.f32 %v2936_v17, 0.0  ;;  %v4370_v8 = vld [vmem:[%s4807_s13 + $0x8] sm:$0xff] }
 0x2ec   : > { %v2819_v5 = vpop.f32.mrf.mxu1  ;;  %4054 = vmatmul.mubr.msk.bf16.gmra.mxu0 %vm1365_vm7, %v2987_v6 }
 0x2ed   : > { %v2971_v29 = vmax.f32 %v2939_v27, 0.0  ;;  %v2937_v48 = vadd.f32 %v5624_v57, %v2898_v26  ;;  %v2862_v43 = vadd.f32 %v2819_v5, %v2482_v46  ;;  %v2903_v21 = vmul.f32 %v5616_v44, %v2864_v15  ;;  %v4371_v26 = vld [vmem:[%s4807_s13 + $0x30] sm:$0xff] }
 0x2ee   : > { %v4030_v12 = vpop.f32.mrf.mxu1 }
 0x2ef   : > { %v2989_v36 = vpack.c.bf16 %v2971_v29, %v2970_v63  ;;  %v2969_v33 = vmax.f32 %v2937_v48, 0.0  ;;  %v2901_v14 = vmul.f32 %v5616_v44, %v2862_v43  ;;  %v2865_v23 = vadd.f32 %v4030_v12, %v2493_v11  ;;  %v4372_v48 = vld [vmem:[%s4807_s13 + $0x20] sm:$0xff]  ;;  %v4373_v12 = vld [vmem:[%s4807_s13 + $0x38] sm:$0xff] }
 0x2f0   : > { %v2822_v50 = vpop.f32.mrf.mxu1  ;;  %v2942_v45 = vadd.f32 %v5624_v57, %v2903_v21 }
 0x2f1   : > { %v2988_v18 = vpack.c.bf16 %v2969_v33, %v2968_v38  ;;  %v2863_v37 = vadd.f32 %v2822_v50, %v2485_v42  ;;  %v2904_v13 = vmul.f32 %v5616_v44, %v2865_v23  ;;  %v2940_v20 = vadd.f32 %v5624_v57, %v2901_v14  ;;  %v4374_v50 = vld [vmem:[%s4807_s13 + $0x28] sm:$0xff] }
 0x2f2   : > { %v2974_v56 = vmax.f32 %v2942_v45, 0.0 }
 0x2f3   : > { %v2902_v62 = vmul.f32 %v5616_v44, %v2863_v37  ;;  %4057 = vmatprep.mubr.msk.bf16.mxu0 %vm1365_vm7, %v2988_v18  ;;  %v2943_v24 = vadd.f32 %v5624_v57, %v2904_v13  ;;  %v2972_v52 = vmax.f32 %v2940_v20, 0.0  ;;  %v5763_v44 = vld [vmem:[%s6055_s10] ss:$0 sm:$0xff] }
 0x2f4   : > { %4058 = vmatmul.mubr.msk.bf16.gmra.mxu0 %vm1365_vm7, %v2989_v36 }
 0x2f5   : > { %v2941_v1 = vadd.f32 %v5624_v57, %v2902_v62  ;;  %v2975_v30 = vmax.f32 %v2943_v24, 0.0  ;;  %v4375_v24 = vld [vmem:[%s4807_s13 + $0x50] sm:$0xff] }
 0x2f7   : > { %v2973_v40 = vmax.f32 %v2941_v1, 0.0  ;;  %v2991_v2 = vpack.c.bf16 %v2975_v30, %v2974_v56 }
 0x2f9   : > { %v2990_v59 = vpack.c.bf16 %v2973_v40, %v2972_v52 }
 0x2fb   : > { %4061 = vmatprep.mubr.msk.bf16.mxu0 %vm1365_vm7, %v2990_v59 }
 0x2fc   : > { %4062 = vmatmul.mubr.msk.bf16.gmra.mxu0 %vm1365_vm7, %v2991_v2  ;;  %v4376_v2 = vld [vmem:[%s4807_s13 + $0x40] sm:$0xff] }
 0x384   : > { %v4035_v57 = vpop.f32.mrf.mxu0 }
 0x385   : > { %v3214_v58 = vmul.f32 %v4035_v57, %v5763_v44 }
 0x386   : > { %v3078_v9 = vpop.f32.mrf.mxu0 }
 0x387   : > { %v3253_v16 = vadd.f32 %v5768_v31, %v3214_v58  ;;  %v3212_v28 = vmul.f32 %v5763_v44, %v3078_v9 }
 0x388   : > { %v4036_v41 = vpop.f32.mrf.mxu0 }
 0x389   : > { %v3285_v55 = vadd.f32 %v4367_v4, %v3253_v16  ;;  %v3251_v49 = vadd.f32 %v5768_v31, %v3212_v28  ;;  %v3215_v53 = vmul.f32 %v4036_v41, %v5763_v44  ;;  %v4377_v28 = vld [vmem:[%s4807_s13 + $0x58] sm:$0xff] }
 0x38a   : > { %v3081_v61 = vpop.f32.mrf.mxu0 }
 0x38b   : > { %v3317_v25 = vmax.f32 %v3285_v55, 0.0  ;;  %v3283_v22 = vadd.f32 %v4368_v10, %v3251_v49  ;;  %v3254_v6 = vadd.f32 %v5768_v31, %v3215_v53  ;;  %v3213_v3 = vmul.f32 %v5763_v44, %v3081_v61  ;;  %v4378_v61 = vld [vmem:[%s4807_s13 + $0x48] sm:$0xff] }
 0x38c   : > { %v4039_v19 = vpop.f32.mrf.mxu0 }
 0x38d   : > { %3349 = vst.msk [vmem:[%s5781_s27 + $0x10] sm:$0xff] %vm627_vm0, %v3317_v25  ;;  %v3315_v0 = vmax.f32 %v3283_v22, 0.0  ;;  %v3286_v54 = vadd.f32 %v4369_v7, %v3254_v6  ;;  %v3252_v47 = vadd.f32 %v5768_v31, %v3213_v3  ;;  %v3218_v60 = vmul.f32 %v4039_v19, %v5763_v44  ;;  %v4379_v19 = vld [vmem:[%s4807_s13 + $0x70] sm:$0xff] }
 0x38e   : > { %v3094_v39 = vpop.f32.mrf.mxu0 }
 0x38f   : > { %3347 = vst.msk [vmem:[%s5781_s27] sm:$0xff] %vm627_vm0, %v3315_v0  ;;  %v3318_v51 = vmax.f32 %v3286_v54, 0.0  ;;  %v3284_v46 = vadd.f32 %v4370_v8, %v3252_v47  ;;  %v3257_v34 = vadd.f32 %v5768_v31, %v3218_v60  ;;  %v3216_v32 = vmul.f32 %v5763_v44, %v3094_v39  ;;  %v4380_v39 = vld [vmem:[%s4807_s13 + $0x60] sm:$0xff] }
 0x390   : > { %v4040_v17 = vpop.f32.mrf.mxu0 }
 0x391   : > { %3350 = vst.msk [vmem:[%s5781_s27 + $0x18] sm:$0xff] %vm627_vm0, %v3318_v51  ;;  %v3316_v27 = vmax.f32 %v3284_v46, 0.0  ;;  %v3289_v15 = vadd.f32 %v4371_v26, %v3257_v34  ;;  %v3255_v5 = vadd.f32 %v5768_v31, %v3216_v32  ;;  %v3219_v35 = vmul.f32 %v4040_v17, %v5763_v44  ;;  %v4381_v17 = vld [vmem:[%s4807_s13 + $0x78] sm:$0xff] }
 0x392   : > { %v3097_v63 = vpop.f32.mrf.mxu0 }
 0x393   : > { %3348 = vst.msk [vmem:[%s5781_s27 + $0x8] sm:$0xff] %vm627_vm0, %v3316_v27  ;;  %v3321_v29 = vmax.f32 %v3289_v15, 0.0  ;;  %v3287_v43 = vadd.f32 %v4372_v48, %v3255_v5  ;;  %v3258_v11 = vadd.f32 %v5768_v31, %v3219_v35  ;;  %v3217_v42 = vmul.f32 %v5763_v44, %v3097_v63  ;;  %v4382_v63 = vld [vmem:[%s4807_s13 + $0x68] sm:$0xff] }
 0x394   : > { %v4043_v33 = vpop.f32.mrf.mxu0 }
 0x395   : > { %3353 = vst.msk [vmem:[%s5781_s27 + $0x30] sm:$0xff] %vm627_vm0, %v3321_v29  ;;  %v3319_v21 = vmax.f32 %v3287_v43, 0.0  ;;  %v3290_v38 = vadd.f32 %v4373_v12, %v3258_v11  ;;  %v3256_v36 = vadd.f32 %v5768_v31, %v3217_v42  ;;  %v3222_v14 = vmul.f32 %v4043_v33, %v5763_v44 }
 0x396   : > { %v3110_v37 = vpop.f32.mrf.mxu0 }
 0x397   : > { %3351 = vst.msk [vmem:[%s5781_s27 + $0x20] sm:$0xff] %vm627_vm0, %v3319_v21  ;;  %v3322_v23 = vmax.f32 %v3290_v38, 0.0  ;;  %v3288_v18 = vadd.f32 %v4374_v50, %v3256_v36  ;;  %v3261_v45 = vadd.f32 %v5768_v31, %v3222_v14  ;;  %v3220_v13 = vmul.f32 %v5763_v44, %v3110_v37  ;;  %v4383_v21 = vld [vmem:[%s4807_s13 + $0x90] sm:$0xff] }
 0x398   : > { %v4044_v62 = vpop.f32.mrf.mxu0 }
 0x399   : > { %3354 = vst.msk [vmem:[%s5781_s27 + $0x38] sm:$0xff] %vm627_vm0, %v3322_v23  ;;  %v3320_v20 = vmax.f32 %v3288_v18, 0.0  ;;  %v3293_v1 = vadd.f32 %v4375_v24, %v3261_v45  ;;  %v3259_v56 = vadd.f32 %v5768_v31, %v3220_v13  ;;  %v3223_v30 = vmul.f32 %v4044_v62, %v5763_v44  ;;  %v4384_v23 = vld [vmem:[%s4807_s13 + $0x80] sm:$0xff] }
 0x39a   : > { %v3113_v52 = vpop.f32.mrf.mxu0 }
 0x39b   : > { %3352 = vst.msk [vmem:[%s5781_s27 + $0x28] sm:$0xff] %vm627_vm0, %v3320_v20  ;;  %v3325_v40 = vmax.f32 %v3293_v1, 0.0  ;;  %v3291_v59 = vadd.f32 %v4376_v2, %v3259_v56  ;;  %v3262_v57 = vadd.f32 %v5768_v31, %v3223_v30  ;;  %v3221_v58 = vmul.f32 %v5763_v44, %v3113_v52  ;;  %v4385_v20 = vld [vmem:[%s4807_s13 + $0x98] sm:$0xff]  ;;  %v4386_v52 = vld [vmem:[%s4807_s13 + $0x88] sm:$0xff] }
 0x39c   : > { %v4047_v9 = vpop.f32.mrf.mxu0 }
 0x39d   : > { %3357 = vst.msk [vmem:[%s5781_s27 + $0x50] sm:$0xff] %vm627_vm0, %v3325_v40  ;;  %v3323_v16 = vmax.f32 %v3291_v59, 0.0  ;;  %v3294_v41 = vadd.f32 %v4377_v28, %v3262_v57  ;;  %v3260_v4 = vadd.f32 %v5768_v31, %v3221_v58  ;;  %v3226_v55 = vmul.f32 %v4047_v9, %v5763_v44  ;;  %v4387_v9 = vld [vmem:[%s4807_s13 + $0xb0] sm:$0xff] }
 0x39e   : > { %v3126_v49 = vpop.f32.mrf.mxu0 }
 0x39f   : > { %3355 = vst.msk [vmem:[%s5781_s27 + $0x40] sm:$0xff] %vm627_vm0, %v3323_v16  ;;  %v3326_v53 = vmax.f32 %v3294_v41, 0.0  ;;  %v3292_v25 = vadd.f32 %v4378_v61, %v3260_v4  ;;  %v3265_v10 = vadd.f32 %v5768_v31, %v3226_v55  ;;  %v3224_v22 = vmul.f32 %v5763_v44, %v3126_v49  ;;  %v4388_v49 = vld [vmem:[%s4807_s13 + $0xa0] sm:$0xff] }
 0x3a0   : > { %v4048_v6 = vpop.f32.mrf.mxu0 }
 0x3a1   : > { %3358 = vst.msk [vmem:[%s5781_s27 + $0x58] sm:$0xff] %vm627_vm0, %v3326_v53  ;;  %v3324_v3 = vmax.f32 %v3292_v25, 0.0  ;;  %v3297_v0 = vadd.f32 %v4379_v19, %v3265_v10  ;;  %v3263_v7 = vadd.f32 %v5768_v31, %v3224_v22  ;;  %v3227_v54 = vmul.f32 %v4048_v6, %v5763_v44  ;;  %v4389_v6 = vld [vmem:[%s4807_s13 + $0xb8] sm:$0xff] }
 0x3a2   : > { %v3129_v47 = vpop.f32.mrf.mxu0 }
 0x3a3   : > { %3356 = vst.msk [vmem:[%s5781_s27 + $0x48] sm:$0xff] %vm627_vm0, %v3324_v3  ;;  %v3329_v60 = vmax.f32 %v3297_v0, 0.0  ;;  %v3295_v51 = vadd.f32 %v4380_v39, %v3263_v7  ;;  %v3266_v8 = vadd.f32 %v5768_v31, %v3227_v54  ;;  %v3225_v46 = vmul.f32 %v5763_v44, %v3129_v47  ;;  %v4390_v47 = vld [vmem:[%s4807_s13 + $0xa8] sm:$0xff] }
 0x3a4   : > { %v4051_v34 = vpop.f32.mrf.mxu0 }
 0x3a5   : > { %3361 = vst.msk [vmem:[%s5781_s27 + $0x70] sm:$0xff] %vm627_vm0, %v3329_v60  ;;  %v3327_v32 = vmax.f32 %v3295_v51, 0.0  ;;  %v3298_v27 = vadd.f32 %v4381_v17, %v3266_v8  ;;  %v3264_v26 = vadd.f32 %v5768_v31, %v3225_v46  ;;  %v3230_v15 = vmul.f32 %v4051_v34, %v5763_v44  ;;  %v4391_v34 = vld [vmem:[%s4807_s13 + $0xd0] sm:$0xff] }
 0x3a6   : > { %v3142_v5 = vpop.f32.mrf.mxu0 }
 0x3a7   : > { %3359 = vst.msk [vmem:[%s5781_s27 + $0x60] sm:$0xff] %vm627_vm0, %v3327_v32  ;;  %v3330_v35 = vmax.f32 %v3298_v27, 0.0  ;;  %v3296_v29 = vadd.f32 %v4382_v63, %v3264_v26  ;;  %v3269_v48 = vadd.f32 %v5768_v31, %v3230_v15  ;;  %v3228_v43 = vmul.f32 %v5763_v44, %v3142_v5  ;;  %v4392_v5 = vld [vmem:[%s4807_s13 + $0xc0] sm:$0xff] }
 0x3a8   : > { %v4052_v11 = vpop.f32.mrf.mxu0 }
 0x3a9   : > { %3362 = vst.msk [vmem:[%s5781_s27 + $0x78] sm:$0xff] %vm627_vm0, %v3330_v35  ;;  %v3328_v42 = vmax.f32 %v3296_v29, 0.0  ;;  %v3301_v12 = vadd.f32 %v4383_v21, %v3269_v48  ;;  %v3267_v38 = vadd.f32 %v5768_v31, %v3228_v43  ;;  %v3231_v36 = vmul.f32 %v4052_v11, %v5763_v44  ;;  %v4393_v11 = vld [vmem:[%s4807_s13 + $0xd8] sm:$0xff] }
 0x3aa   : > { %v3145_v33 = vpop.f32.mrf.mxu0 }
 0x3ab   : > { %3360 = vst.msk [vmem:[%s5781_s27 + $0x68] sm:$0xff] %vm627_vm0, %v3328_v42  ;;  %v3333_v14 = vmax.f32 %v3301_v12, 0.0  ;;  %v3299_v50 = vadd.f32 %v4384_v23, %v3267_v38  ;;  %v3270_v18 = vadd.f32 %v5768_v31, %v3231_v36  ;;  %v3229_v37 = vmul.f32 %v5763_v44, %v3145_v33  ;;  %v4394_v33 = vld [vmem:[%s4807_s13 + $0xc8] sm:$0xff] }
 0x3ac   : > { %v4055_v45 = vpop.f32.mrf.mxu0 }
 0x3ad   : > { %3365 = vst.msk [vmem:[%s5781_s27 + $0x90] sm:$0xff] %vm627_vm0, %v3333_v14  ;;  %v3331_v13 = vmax.f32 %v3299_v50, 0.0  ;;  %v3302_v62 = vadd.f32 %v4385_v20, %v3270_v18  ;;  %v3268_v24 = vadd.f32 %v5768_v31, %v3229_v37  ;;  %v3234_v1 = vmul.f32 %v4055_v45, %v5763_v44  ;;  %v4395_v45 = vld [vmem:[%s4807_s13 + $0xf0] sm:$0xff] }
 0x3ae   : > { %v3158_v56 = vpop.f32.mrf.mxu0 }
 0x3af   : > { %3363 = vst.msk [vmem:[%s5781_s27 + $0x80] sm:$0xff] %vm627_vm0, %v3331_v13  ;;  %v3334_v30 = vmax.f32 %v3302_v62, 0.0  ;;  %v3300_v40 = vadd.f32 %v4386_v52, %v3268_v24  ;;  %v3273_v2 = vadd.f32 %v5768_v31, %v3234_v1  ;;  %v3232_v59 = vmul.f32 %v5763_v44, %v3158_v56  ;;  %v4396_v56 = vld [vmem:[%s4807_s13 + $0xe0] sm:$0xff] }
 0x3b0   : > { %v4056_v57 = vpop.f32.mrf.mxu0 }
 0x3b1   : > { %3366 = vst.msk [vmem:[%s5781_s27 + $0x98] sm:$0xff] %vm627_vm0, %v3334_v30  ;;  %v3332_v58 = vmax.f32 %v3300_v40, 0.0  ;;  %v3305_v16 = vadd.f32 %v4387_v9, %v3273_v2  ;;  %v3271_v28 = vadd.f32 %v5768_v31, %v3232_v59  ;;  %v3235_v41 = vmul.f32 %v4056_v57, %v5763_v44  ;;  %v4397_v59 = vld [vmem:[%s4807_s13 + $0xf8] sm:$0xff] }
 0x3b2   : > { %v3161_v4 = vpop.f32.mrf.mxu0 }
 0x3b3   : > { %3364 = vst.msk [vmem:[%s5781_s27 + $0x88] sm:$0xff] %vm627_vm0, %v3332_v58  ;;  %v3337_v55 = vmax.f32 %v3305_v16, 0.0  ;;  %v3303_v53 = vadd.f32 %v4388_v49, %v3271_v28  ;;  %v3274_v61 = vadd.f32 %v5768_v31, %v3235_v41  ;;  %v3233_v25 = vmul.f32 %v5763_v44, %v3161_v4  ;;  %v4398_v16 = vld [vmem:[%s4807_s13 + $0xe8] sm:$0xff]  ;;  %s4579_s13 = smov [#allocation9]  }
 0x3b4   : > { %v4059_v10 = vpop.f32.mrf.mxu0  ;;  %s4487_s14 = sshll.u32 %s4579_s13, 4  ;;  %s4488_s14 = int_to_ptr.vmem [resolvable:$false] %s4487_s14 }
 0x3b5   : > { %3369 = vst.msk [vmem:[%s5781_s27 + $0xb0] sm:$0xff] %vm627_vm0, %v3337_v55  ;;  %v3335_v22 = vmax.f32 %v3303_v53, 0.0  ;;  %v3306_v3 = vadd.f32 %v4389_v6, %v3274_v61  ;;  %v3272_v19 = vadd.f32 %v5768_v31, %v3233_v25  ;;  %v3238_v0 = vmul.f32 %v4059_v10, %v5763_v44  ;;  %s4489_s11 = scalar_lea.vmem %s4488_s14, 8192  ;;  %p4490_p4 = scmp.lt.s32.totalorder %s5939_s28, %s4488_s14 }
 0x3b6   : > { %v3174_v7 = vpop.f32.mrf.mxu0  ;;  %p4491_p10 = scmp.lt.s32.totalorder %s4489_s11, %s4483_s20 }
 0x3b7   : > { %3367 = vst.msk [vmem:[%s5781_s27 + $0xa0] sm:$0xff] %vm627_vm0, %v3335_v22  ;;  %v3338_v54 = vmax.f32 %v3306_v3, 0.0  ;;  %v3304_v60 = vadd.f32 %v4390_v47, %v3272_v19  ;;  %v3277_v39 = vadd.f32 %v5768_v31, %v3238_v0  ;;  %v3236_v51 = vmul.f32 %v5763_v44, %v3174_v7 }
 0x3b8   : > { %v4060_v8 = vpop.f32.mrf.mxu0  ;;  %p4492_p13 = por %p4491_p10, %p4490_p4 }
 0x3b9   : > { %3370 = vst.msk [vmem:[%s5781_s27 + $0xb8] sm:$0xff] %vm627_vm0, %v3338_v54  ;;  %v3336_v46 = vmax.f32 %v3304_v60, 0.0  ;;  %v3309_v32 = vadd.f32 %v4391_v34, %v3277_v39  ;;  %v3275_v17 = vadd.f32 %v5768_v31, %v3236_v51  ;;  %v3239_v27 = vmul.f32 %v4060_v8, %v5763_v44 }
 0x3ba   : > { %v3177_v26 = vpop.f32.mrf.mxu0  ;;  %p4493_p12 = pnand %p4492_p13, %p4486_p3 }
 0x3bb   : > { %3368 = vst.msk [vmem:[%s5781_s27 + $0xa8] sm:$0xff] %vm627_vm0, %v3336_v46  ;;  %v3341_v15 = vmax.f32 %v3309_v32, 0.0  ;;  %v3307_v35 = vadd.f32 %v4392_v5, %v3275_v17  ;;  %v3278_v63 = vadd.f32 %v5768_v31, %v3239_v27  ;;  %v3237_v29 = vmul.f32 %v5763_v44, %v3177_v26 }
 0x3bc   : > { %v4063_v48 = vpop.f32.mrf.mxu0 }
 0x3bd   : > { %3373 = vst.msk [vmem:[%s5781_s27 + $0xd0] sm:$0xff] %vm627_vm0, %v3341_v15  ;;  %v3339_v43 = vmax.f32 %v3307_v35, 0.0  ;;  %v3310_v42 = vadd.f32 %v4393_v11, %v3278_v63  ;;  %v3276_v21 = vadd.f32 %v5768_v31, %v3237_v29  ;;  %v3242_v12 = vmul.f32 %v4063_v48, %v5763_v44 }
 0x3be   : > { %v3190_v38 = vpop.f32.mrf.mxu0 }
 0x3bf   : > { %3371 = vst.msk [vmem:[%s5781_s27 + $0xc0] sm:$0xff] %vm627_vm0, %v3339_v43  ;;  %v3342_v36 = vmax.f32 %v3310_v42, 0.0  ;;  %v3308_v14 = vadd.f32 %v4394_v33, %v3276_v21  ;;  %v3281_v23 = vadd.f32 %v5768_v31, %v3242_v12  ;;  %v3240_v50 = vmul.f32 %v5763_v44, %v3190_v38 }
 0x3c0   : > { %v4064_v18 = vpop.f32.mrf.mxu0 }
 0x3c1   : > { %3374 = vst.msk [vmem:[%s5781_s27 + $0xd8] sm:$0xff] %vm627_vm0, %v3342_v36  ;;  %v3340_v37 = vmax.f32 %v3308_v14, 0.0  ;;  %v3313_v13 = vadd.f32 %v4395_v45, %v3281_v23  ;;  %v3279_v20 = vadd.f32 %v5768_v31, %v3240_v50  ;;  %v3243_v62 = vmul.f32 %v4064_v18, %v5763_v44 }
 0x3c2   : > { %v3193_v24 = vpop.f32.mrf.mxu0 }
 0x3c3   : > { %3372 = vst.msk [vmem:[%s5781_s27 + $0xc8] sm:$0xff] %vm627_vm0, %v3340_v37  ;;  %v3345_v1 = vmax.f32 %v3313_v13, 0.0  ;;  %v3311_v30 = vadd.f32 %v4396_v56, %v3279_v20  ;;  %v3282_v52 = vadd.f32 %v5768_v31, %v3243_v62  ;;  %v3241_v40 = vmul.f32 %v5763_v44, %v3193_v24 }
 0x3c5   : > { %3377 = vst.msk [vmem:[%s5781_s27 + $0xf0] sm:$0xff] %vm627_vm0, %v3345_v1  ;;  %v3343_v2 = vmax.f32 %v3311_v30, 0.0  ;;  %v3314_v57 = vadd.f32 %v4397_v59, %v3282_v52  ;;  %v3280_v58 = vadd.f32 %v5768_v31, %v3241_v40 }
 0x3c7   : > { %3375 = vst.msk [vmem:[%s5781_s27 + $0xe0] sm:$0xff] %vm627_vm0, %v3343_v2  ;;  %v3346_v9 = vmax.f32 %v3314_v57, 0.0  ;;  %v3312_v28 = vadd.f32 %v4398_v16, %v3280_v58 }
 0x3c9   : > { %3378 = vst.msk [vmem:[%s5781_s27 + $0xf8] sm:$0xff] %vm627_vm0, %v3346_v9  ;;  %v3344_v44 = vmax.f32 %v3312_v28, 0.0 }
 0x3cb   : > { %3376 = vst.msk [vmem:[%s5781_s27 + $0xe8] sm:$0xff] %vm627_vm0, %v3344_v44 }
 0x3cc   : > { %4496 = shalt.err (!%p4493_p12)
}
 0x3cd   : > { %s4497_s10 = scalar_lea.hbm %s5935_s23, 4096  ;;  %s4501_s16 = scalar_lea.hbm %s6059_s29, 8192 }
 0x3ce   : > { %p4498_p1 = scmp.ne.s32.totalorder %s5935_s23, %s4497_s10  ;;  %p4502_p6 = scmp.lt.s32.totalorder %s5935_s23, %s6059_s29 }
 0x3cf   : > { %p4503_p7 = scmp.lt.s32.totalorder %s4501_s16, %s4497_s10 }
 0x3d0   : > { %p4499_p2 = pnand %p4498_p1, %p4701_p9 }
 0x3d1   : > { %p4504_p8 = por %p4503_p7, %p4502_p6 }
 0x3d2   : > { %p4500_p5 = pneg %p4499_p2 }
 0x3d4   : > { %p4505_p0 = pnand %p4504_p8, %p4500_p5 }
 0x3d6   : > { %4508 = shalt.err (!%p4505_p0)
}
 0x3d7   : > { %s4580_s19 = smov 128  }
 0x3d8   : > { %4077 = dma.vmem_to_hbm [thread:$0]  (%p4701_p9), %s5939_s28, 4096, %s5935_s23, %s3380_s18, %s4580_s19, %s4580_s19, %s4576_s17  }
 0x3d9 PF: > { %s6060_s30 = sld [smem:[#allocation13_spill]]  ;;  %p6062_p3 = scmp.ge.s32.totalorder %s4567_s26, 2 }
 0x3db   : > { %p4090_p4 = pnand %p6062_p3, %p4708_p11 }
 0x3dd   : > { %p4091_p10 = pneg %p4090_p4 }
 0x3df   : > { %s3411_s20 = sand.u32 1, %s6060_s30  }
 0x3e0   : > { %s3412_s13 = scalar_lea.sflag [#allocation5], %s3411_s20 }
 0x3e1   : > { %4542 = dma.done.wait (%p4091_p10), %s3412_s13, 4096  }
 0x3e2   : > { %4544 = vsyncadd (%p4091_p10), %s3412_s13, 4294963200  ;;  %s31_s26 = sadd.s32 1, %s4567_s26   ;;  %s6063_s1 = sld [smem:[#allocation14_spill]] }
 0x3e3   : > { %p28_p13 = scmp.ge.s32.totalorder %s31_s26, 4   ;;  %s6064_s23 = sld [smem:[#allocation19_spill]] }
 0x3e4   : > { %s6065_s24 = sld [smem:[#allocation16_spill]]  ;;  %s6067_s21 = smov %s4551_s22 }
 0x3e5   : > { %s6066_s25 = sld [smem:[#allocation17_spill]]  ;;  %30 = sbr.rel (!%p28_p13) target bundleno = 13 (0xd), region = 159 }
 0x3e8   : > { %s6068_s22 = smov %s6063_s1 }
 0x3ea   :  { %3417 = vsyncpa [#allocation4], 1 }
 0x3eb   :  { %3419 = vsyncpa [#allocation4 + $0x1], 1 }
 0x3ec   :  { %3420 = vsyncpa [#allocation7], 1 }
 0x3ed   :  { %3422 = vsyncpa [#allocation7 + $0x1], 1 }
 0x3ee   :  { %3423 = vsyncpa [#allocation5], 1 }
 0x3ef   :  { %3425 = vsyncpa [#allocation5 + $0x1], 1 }

</bundles_post_ra>
